<compile_context>
chip_gen: v5e
topology: v5e:2x2
jax: 0.10.0
libtpu: 0.0.40
codegen_flags: <defaults>
</compile_context>

<pallas_src>
import jax
import jax.numpy as jnp
from jax.experimental import pallas as pl
from jax.experimental.pallas import tpu as pltpu

_LANE = 128                   # TPU lane width
_TILE_BYTES = 4 << 20         # ~4 MiB input tile; in+out double-buffered ~= 16 MiB
_VMEM_LIMIT = 32 << 20        # raise v5e's 16 MiB scoped default; within v7x 64 MiB physical
_SMALL_FALLBACK_BYTES = 1 << 20   # below this, plain JAX beats a pallas_call launch
_MIN_GRID_STEPS = 8           # keep the v7x 2-TC megacore split balanced


def _cdiv(a, b):
    return -(-a // b)


def _round_up(a, b):
    return _cdiv(a, b) * b


def _round_down(a, b):
    return (a // b) * b


def _sublane_granule(dtype) -> int:
    # Second-to-last block dim granule: 8 for 4-byte, 16 for 2-byte, 32 for 1-byte dtypes.
    return {4: 8, 2: 16, 1: 32}.get(jnp.dtype(dtype).itemsize, 8)


def _wscale_kernel_native(scale_ref, x_ref, o_ref):
    # Multiply in the activation dtype (matches PyTorch tensor * python-float for
    # float tensors); scale lives in SMEM as f32 and is cast once per block.
    o_ref[...] = x_ref[...] * scale_ref[0].astype(o_ref.dtype)


def _wscale_kernel_f32(scale_ref, x_ref, o_ref):
    # Widening path for non-float activations.
    o_ref[...] = (x_ref[...].astype(jnp.float32) * scale_ref[0]).astype(o_ref.dtype)


def _choose_cols(total: int) -> int:
    # Prefer the widest lane-dense width that exactly divides `total` so no padding
    # copy (and no output slice) is needed; otherwise 1024 with a tiny tail pad.
    if total % _LANE == 0:
        for c in (2048, 1024, 512, 256, 128):
            if total % c == 0:
                return c
    return 1024


def _choose_bm(rows: int, cols: int, itemsize: int, granule: int) -> int:
    bm = max(granule, _round_down(_TILE_BYTES // (cols * itemsize), granule))
    if rows <= bm:
        return rows  # single block == full array dims (waives (8,128) divisibility)
    steps = _cdiv(rows, bm)
    if steps < _MIN_GRID_STEPS:
        # Rebalance into ~8 even steps so a v7x megacore split isn't 2/1 lopsided;
        # a few extra ~0.35us grid steps are noise for a DMA-bound op of this size.
        steps = min(_MIN_GRID_STEPS, _cdiv(rows, granule))
        bm = max(granule, _round_up(_cdiv(rows, steps), granule))
    return bm


def wscale_forward(x: jax.Array, scale: float) -> jax.Array:
    """out = x * scale via a tiled, lane-dense Pallas TPU kernel."""
    orig_shape = x.shape
    total = x.size
    dtype = x.dtype
    itemsize = jnp.dtype(dtype).itemsize

    # Small-input fast path: launch + layout plumbing would dwarf the work.
    if total == 0 or total * itemsize < _SMALL_FALLBACK_BYTES:
        if jnp.issubdtype(dtype, jnp.floating):
            return x * jnp.asarray(scale, dtype=dtype)
        return (x.astype(jnp.float32) * jnp.float32(scale)).astype(dtype)

    cols = _choose_cols(total)
    rows = _cdiv(total, cols)
    padded_total = rows * cols

    x_flat = x.reshape(-1)
    needs_pad = padded_total != total
    if needs_pad:
        # Only fires when total is not a multiple of 128; pads at most cols-1 elements.
        x_flat = jnp.pad(x_flat, (0, padded_total - total))
    x2d = x_flat.reshape(rows, cols)

    granule = _sublane_granule(dtype)
    bm = _choose_bm(rows, cols, itemsize, granule)
    grid = (_cdiv(rows, bm),)

    scale_arr = jnp.asarray([scale], dtype=jnp.float32)
    kernel = (_wscale_kernel_native
              if jnp.issubdtype(dtype, jnp.floating) else _wscale_kernel_f32)

    # TODO(synk): with caller-side donation of x (and the no-pad path), pass
    # input_output_aliases={1: 0} to drop the duplicate HBM output allocation.
    out2d = pl.pallas_call(
        kernel,
        out_shape=jax.ShapeDtypeStruct((rows, cols), dtype),
        grid_spec=pltpu.PrefetchScalarGridSpec(
            num_scalar_prefetch=0,
            grid=grid,
            in_specs=[
                pl.BlockSpec(memory_space=pltpu.MemorySpace.SMEM),  # scale (1,) f32
                pl.BlockSpec((bm, cols), lambda i: (i, 0)),          # x row tile
            ],
            out_specs=pl.BlockSpec((bm, cols), lambda i: (i, 0)),
        ),
        compiler_params=pltpu.CompilerParams(
            dimension_semantics=("parallel",),   # independent tiles -> megacore OK
            vmem_limit_bytes=_VMEM_LIMIT,
        ),
        cost_estimate=pl.CostEstimate(
            flops=padded_total,
            transcendentals=0,
            bytes_accessed=2 * padded_total * itemsize,
        ),
    )(scale_arr, x2d)

    if needs_pad:
        return out2d.reshape(-1)[:total].reshape(orig_shape)
    return out2d.reshape(orig_shape)


class WScaleLayerPallas:
    """Mirror of PyTorch WScaleLayer: scale = sqrt(gain / incoming.weight[0].numel())."""

    def __init__(self, incoming_weight_shape, gain: float = 2.0):
        self.gain = gain
        numel_w0 = 1
        for d in incoming_weight_shape[1:]:
            numel_w0 *= d
        self.scale = (self.gain / numel_w0) ** 0.5

    def __call__(self, x):
        return wscale_forward(x, self.scale)

    def __repr__(self):
        return "{}(gain={})".format(self.__class__.__name__, self.gain)


if __name__ == "__main__":
    key = jax.random.PRNGKey(0)
    k1, k2, k3, k4 = jax.random.split(key, 4)

    # Synthetic "incoming" conv layer: Conv2d(4, 4, kernel=3) -> weight (4, 4, 3, 3),
    # weight[0].numel() = 4*3*3 = 36, scale = sqrt(2/36).
    incoming_weight_shape = (4, 4, 3, 3)
    layer = WScaleLayerPallas(incoming_weight_shape, gain=2)
    s = jnp.float32(layer.scale)

    # 1) Small activation (module-scale demo shape): plain-JAX fast path.
    x_small = jax.random.normal(k1, (2, 4, 16, 16), dtype=jnp.float32)
    out_small = jax.block_until_ready(layer(x_small))
    assert out_small.shape == x_small.shape and out_small.dtype == x_small.dtype
    assert jnp.allclose(out_small, x_small * s, rtol=1e-6, atol=1e-6)

    # 2) Larger f32 activation (2 MiB): Pallas path, no-pad / no-slice fast path.
    x_f32 = jax.random.normal(k2, (8, 16, 64, 64), dtype=jnp.float32)
    out_f32 = jax.block_until_ready(layer(x_f32))
    assert out_f32.shape == x_f32.shape and out_f32.dtype == x_f32.dtype
    assert jnp.allclose(out_f32, x_f32 * s, rtol=1e-6, atol=1e-6)

    # 3) Element count not a multiple of 128: Pallas path with tail padding.
    x_odd = jax.random.normal(k3, (513, 1023), dtype=jnp.float32)
    out_odd = jax.block_until_ready(layer(x_odd))
    assert out_odd.shape == x_odd.shape and out_odd.dtype == x_odd.dtype
    assert jnp.allclose(out_odd, x_odd * s, rtol=1e-6, atol=1e-6)

    # 4) bf16 activation: native-dtype multiply inside the kernel.
    x_bf16 = jax.random.normal(k4, (8, 16, 64, 64), dtype=jnp.float32).astype(jnp.bfloat16)
    out_bf16 = jax.block_until_ready(layer(x_bf16))
    ref_bf16 = x_bf16 * s.astype(jnp.bfloat16)
    assert out_bf16.dtype == jnp.bfloat16 and out_bf16.shape == x_bf16.shape
    assert jnp.allclose(out_bf16.astype(jnp.float32), ref_bf16.astype(jnp.float32),
                        rtol=2e-2, atol=2e-2)

    print("KERNEL_OK")
</pallas_src>

<mosaic_0001>
module attributes {stable_mosaic.version = 11 : i64} {
  func.func @_wscale_kernel_native(%arg0: i32, %arg1: memref<1xf32, #tpu.memory_space<smem>>, %arg2: memref<256x2048xf32, #tpu.memory_space<vmem>>, %arg3: memref<256x2048xf32, #tpu.memory_space<vmem>>) attributes {dimension_semantics = [#tpu.dimension_semantics<parallel>], iteration_bounds = array<i64: 1>, scalar_prefetch = 0 : i64, scratch_operands = 0 : i64, tpu.core_type = #tpu.core_type<tc>, window_params = [{transform_indices = @transform_0, window_bounds = array<i64: 1>}, {transform_indices = @transform_1, window_bounds = array<i64: 256, 2048>}, {transform_indices = @transform_2, window_bounds = array<i64: 256, 2048>}]} {
    %c0 = arith.constant 0 : index
    %c0_0 = arith.constant 0 : index
    %0 = vector.load %arg2[%c0, %c0_0] : memref<256x2048xf32, #tpu.memory_space<vmem>>, vector<256x2048xf32>
    %c0_1 = arith.constant 0 : index
    %1 = memref.load %arg1[%c0_1] : memref<1xf32, #tpu.memory_space<smem>>
    %2 = vector.broadcast %1 : f32 to vector<256x2048xf32>
    %3 = arith.mulf %0, %2 : vector<256x2048xf32>
    %c0_2 = arith.constant 0 : index
    %c0_3 = arith.constant 0 : index
    %4 = vector.load %arg3[%c0_2, %c0_3] : memref<256x2048xf32, #tpu.memory_space<vmem>>, vector<256x2048xf32>
    tpu.vector_store %arg3[%c0_2, %c0_3], %3 {strides = array<i32>} : memref<256x2048xf32, #tpu.memory_space<vmem>>, vector<256x2048xf32>,
    return
  }
  func.func @transform_0(%arg0: i32) -> i32 {
    %c0_i32 = arith.constant 0 : i32
    %c0_i32_0 = arith.constant 0 : i32
    return %c0_i32 : i32
  }
  func.func @transform_1(%arg0: i32) -> (i32, i32) {
    %c0_i32 = arith.constant 0 : i32
    %c0_i32_0 = arith.constant 0 : i32
    return %arg0, %c0_i32 : i32, i32
  }
  func.func @transform_2(%arg0: i32) -> (i32, i32) {
    %c0_i32 = arith.constant 0 : i32
    %c0_i32_0 = arith.constant 0 : i32
    return %arg0, %c0_i32 : i32, i32
  }
}

</mosaic_0001>

<bundles_post_ra>
// kernel: tpu_custom_call.1
= control target key start
LH: loop header
LB: loop body
LE: loop exit
PB: predicated region body
PF: predicated region fallthrough
CT: control target
= control target key end

     0   :  { %8 = vsyncpa [#allocation4], 0  ;;  %s2190_s0 = inlined_call_operand.<no memory space> [shape: f32[1], index: 0, kind: input, shape index: {}]   ;;  %s2191_s1 = inlined_call_operand.hbm [shape: f32[256,2048], index: 1, kind: input, shape index: {}]   ;;  %s2192_s2 = inlined_call_operand.hbm [shape: f32[256,2048], index: 2, kind: output, shape index: {}]  }
   0x1   :  { %9 = vsyncpa [#allocation5], 0  ;;  %s16_s11 = sshll.u32 %s2191_s1, 4  ;;  %s1642_s12 = smov [#allocation3]   ;;  %s17_s11 = int_to_ptr.hbm [resolvable:$true] %s16_s11 }
   0x2   :  { %s18_s13 = sshll.u32 %s1642_s12, 4  ;;  %s1643_s14 = smov 2048   ;;  %s19_s13 = int_to_ptr.vmem [resolvable:$true] %s18_s13 }
   0x3   :  { %s1644_s15 = smov 128  }
   0x4   :  { %24 = dma.hbm_to_vmem [thread:$0]  %s17_s11, 65536, %s19_s13, [#allocation4], %s1643_s14, %s1643_s14, %s1644_s15  }
   0x5   :  { %1638 = dma.done.wait [#allocation4], 65536  }
   0x6   :  { %1639 = vsyncadd [#allocation4], 4294901760  ;;  %v1670_v0 = vstv %s2190_s0  ;;  %v29_v1 = vld [vmem:[#allocation3] sm:$0xff]  ;;  %v30_v2 = vld [vmem:[#allocation3 + $0x8] sm:$0xff]  ;;  %s1645_s0 = smov [#allocation6]   ;;  %s1573_s20 = sshll.u32 %s2192_s2, 4  ;;  %s1574_s20 = int_to_ptr.hbm [resolvable:$true] %s1573_s20 }
   0x7   :  { %v31_v3 = vld [vmem:[#allocation3 + $0x10] sm:$0xff]  ;;  %v543_v4 = vmul.f32 %v1670_v0, %v29_v1  ;;  %v544_v5 = vmul.f32 %v1670_v0, %v30_v2  ;;  %v32_v7 = vld [vmem:[#allocation3 + $0x18] sm:$0xff]  ;;  %v33_v8 = vld [vmem:[#allocation3 + $0x20] sm:$0xff]  ;;  %s1571_s1 = sshll.u32 %s1645_s0, 4  ;;  %s1572_s1 = int_to_ptr.vmem [resolvable:$true] %s1571_s1 }
   0x8   :  { %v545_v6 = vmul.f32 %v1670_v0, %v31_v3  ;;  %v34_v9 = vld [vmem:[#allocation3 + $0x28] sm:$0xff]  ;;  %v546_v10 = vmul.f32 %v1670_v0, %v32_v7  ;;  %v35_v11 = vld [vmem:[#allocation3 + $0x30] sm:$0xff]  ;;  %v547_v12 = vmul.f32 %v1670_v0, %v33_v8  ;;  %v36_v13 = vld [vmem:[#allocation3 + $0x38] sm:$0xff] }
   0x9   :  { %1055 = vst [vmem:[#allocation6] sm:$0xff] %v543_v4  ;;  %v548_v14 = vmul.f32 %v1670_v0, %v34_v9  ;;  %v37_v15 = vld [vmem:[#allocation3 + $0x40] sm:$0xff]  ;;  %v549_v16 = vmul.f32 %v1670_v0, %v35_v11  ;;  %v38_v17 = vld [vmem:[#allocation3 + $0x48] sm:$0xff]  ;;  %v550_v18 = vmul.f32 %v1670_v0, %v36_v13  ;;  %v39_v19 = vld [vmem:[#allocation3 + $0x50] sm:$0xff] }
   0xa   :  { %1056 = vst [vmem:[#allocation6 + $0x8] sm:$0xff] %v544_v5  ;;  %v551_v20 = vmul.f32 %v1670_v0, %v37_v15  ;;  %v40_v21 = vld [vmem:[#allocation3 + $0x58] sm:$0xff]  ;;  %v552_v22 = vmul.f32 %v1670_v0, %v38_v17  ;;  %v41_v23 = vld [vmem:[#allocation3 + $0x60] sm:$0xff]  ;;  %v553_v24 = vmul.f32 %v1670_v0, %v39_v19  ;;  %v42_v25 = vld [vmem:[#allocation3 + $0x68] sm:$0xff] }
   0xb   :  { %1057 = vst [vmem:[#allocation6 + $0x10] sm:$0xff] %v545_v6  ;;  %v554_v26 = vmul.f32 %v1670_v0, %v40_v21  ;;  %v43_v27 = vld [vmem:[#allocation3 + $0x70] sm:$0xff]  ;;  %v555_v28 = vmul.f32 %v1670_v0, %v41_v23  ;;  %v44_v29 = vld [vmem:[#allocation3 + $0x78] sm:$0xff]  ;;  %v556_v30 = vmul.f32 %v1670_v0, %v42_v25  ;;  %v45_v31 = vld [vmem:[#allocation3 + $0x80] sm:$0xff] }
   0xc   :  { %1058 = vst [vmem:[#allocation6 + $0x18] sm:$0xff] %v546_v10  ;;  %v557_v32 = vmul.f32 %v1670_v0, %v43_v27  ;;  %v46_v33 = vld [vmem:[#allocation3 + $0x88] sm:$0xff]  ;;  %v558_v34 = vmul.f32 %v1670_v0, %v44_v29  ;;  %v47_v35 = vld [vmem:[#allocation3 + $0x90] sm:$0xff]  ;;  %v559_v36 = vmul.f32 %v1670_v0, %v45_v31  ;;  %v48_v37 = vld [vmem:[#allocation3 + $0x98] sm:$0xff] }
   0xd   :  { %1059 = vst [vmem:[#allocation6 + $0x20] sm:$0xff] %v547_v12  ;;  %v560_v38 = vmul.f32 %v1670_v0, %v46_v33  ;;  %v49_v39 = vld [vmem:[#allocation3 + $0xa0] sm:$0xff]  ;;  %v561_v40 = vmul.f32 %v1670_v0, %v47_v35  ;;  %v50_v41 = vld [vmem:[#allocation3 + $0xa8] sm:$0xff]  ;;  %v562_v42 = vmul.f32 %v1670_v0, %v48_v37  ;;  %v51_v43 = vld [vmem:[#allocation3 + $0xb0] sm:$0xff] }
   0xe   :  { %1060 = vst [vmem:[#allocation6 + $0x28] sm:$0xff] %v548_v14  ;;  %v563_v44 = vmul.f32 %v1670_v0, %v49_v39  ;;  %v52_v45 = vld [vmem:[#allocation3 + $0xb8] sm:$0xff]  ;;  %v564_v46 = vmul.f32 %v1670_v0, %v50_v41  ;;  %v53_v47 = vld [vmem:[#allocation3 + $0xc0] sm:$0xff]  ;;  %v565_v48 = vmul.f32 %v1670_v0, %v51_v43  ;;  %v54_v49 = vld [vmem:[#allocation3 + $0xc8] sm:$0xff] }
   0xf   :  { %1061 = vst [vmem:[#allocation6 + $0x30] sm:$0xff] %v549_v16  ;;  %v566_v50 = vmul.f32 %v1670_v0, %v52_v45  ;;  %v55_v51 = vld [vmem:[#allocation3 + $0xd0] sm:$0xff]  ;;  %v567_v52 = vmul.f32 %v1670_v0, %v53_v47  ;;  %v56_v53 = vld [vmem:[#allocation3 + $0xd8] sm:$0xff]  ;;  %v568_v54 = vmul.f32 %v1670_v0, %v54_v49  ;;  %v57_v55 = vld [vmem:[#allocation3 + $0xe0] sm:$0xff] }
  0x10   :  { %1062 = vst [vmem:[#allocation6 + $0x38] sm:$0xff] %v550_v18  ;;  %v569_v56 = vmul.f32 %v1670_v0, %v55_v51  ;;  %v58_v57 = vld [vmem:[#allocation3 + $0xe8] sm:$0xff]  ;;  %v570_v58 = vmul.f32 %v1670_v0, %v56_v53  ;;  %v59_v59 = vld [vmem:[#allocation3 + $0xf0] sm:$0xff]  ;;  %v571_v60 = vmul.f32 %v1670_v0, %v57_v55  ;;  %v60_v61 = vld [vmem:[#allocation3 + $0xf8] sm:$0xff] }
  0x11   :  { %1063 = vst [vmem:[#allocation6 + $0x40] sm:$0xff] %v551_v20  ;;  %v572_v62 = vmul.f32 %v1670_v0, %v58_v57  ;;  %v61_v63 = vld [vmem:[#allocation3 + $0x100] sm:$0xff]  ;;  %v573_v1 = vmul.f32 %v1670_v0, %v59_v59  ;;  %v62_v2 = vld [vmem:[#allocation3 + $0x108] sm:$0xff]  ;;  %v574_v3 = vmul.f32 %v1670_v0, %v60_v61  ;;  %v63_v4 = vld [vmem:[#allocation3 + $0x110] sm:$0xff] }
  0x12   :  { %1064 = vst [vmem:[#allocation6 + $0x48] sm:$0xff] %v552_v22  ;;  %v575_v5 = vmul.f32 %v1670_v0, %v61_v63  ;;  %v64_v6 = vld [vmem:[#allocation3 + $0x118] sm:$0xff]  ;;  %v576_v7 = vmul.f32 %v1670_v0, %v62_v2  ;;  %v65_v8 = vld [vmem:[#allocation3 + $0x120] sm:$0xff]  ;;  %v577_v9 = vmul.f32 %v1670_v0, %v63_v4  ;;  %v66_v10 = vld [vmem:[#allocation3 + $0x128] sm:$0xff] }
  0x13   :  { %1065 = vst [vmem:[#allocation6 + $0x50] sm:$0xff] %v553_v24  ;;  %v578_v11 = vmul.f32 %v1670_v0, %v64_v6  ;;  %v67_v12 = vld [vmem:[#allocation3 + $0x130] sm:$0xff]  ;;  %v579_v13 = vmul.f32 %v1670_v0, %v65_v8  ;;  %v68_v14 = vld [vmem:[#allocation3 + $0x138] sm:$0xff]  ;;  %v580_v15 = vmul.f32 %v1670_v0, %v66_v10  ;;  %v69_v16 = vld [vmem:[#allocation3 + $0x140] sm:$0xff] }
  0x14   :  { %1066 = vst [vmem:[#allocation6 + $0x58] sm:$0xff] %v554_v26  ;;  %v581_v17 = vmul.f32 %v1670_v0, %v67_v12  ;;  %v70_v18 = vld [vmem:[#allocation3 + $0x148] sm:$0xff]  ;;  %v582_v19 = vmul.f32 %v1670_v0, %v68_v14  ;;  %v71_v20 = vld [vmem:[#allocation3 + $0x150] sm:$0xff]  ;;  %v583_v21 = vmul.f32 %v1670_v0, %v69_v16  ;;  %v72_v22 = vld [vmem:[#allocation3 + $0x158] sm:$0xff] }
  0x15   :  { %1067 = vst [vmem:[#allocation6 + $0x60] sm:$0xff] %v555_v28  ;;  %v584_v23 = vmul.f32 %v1670_v0, %v70_v18  ;;  %v73_v24 = vld [vmem:[#allocation3 + $0x160] sm:$0xff]  ;;  %v585_v25 = vmul.f32 %v1670_v0, %v71_v20  ;;  %v74_v26 = vld [vmem:[#allocation3 + $0x168] sm:$0xff]  ;;  %v586_v27 = vmul.f32 %v1670_v0, %v72_v22  ;;  %v75_v28 = vld [vmem:[#allocation3 + $0x170] sm:$0xff] }
  0x16   :  { %1068 = vst [vmem:[#allocation6 + $0x68] sm:$0xff] %v556_v30  ;;  %v587_v29 = vmul.f32 %v1670_v0, %v73_v24  ;;  %v76_v30 = vld [vmem:[#allocation3 + $0x178] sm:$0xff]  ;;  %v588_v31 = vmul.f32 %v1670_v0, %v74_v26  ;;  %v589_v33 = vmul.f32 %v1670_v0, %v75_v28 }
  0x17   :  { %1069 = vst [vmem:[#allocation6 + $0x70] sm:$0xff] %v557_v32  ;;  %v77_v32 = vld [vmem:[#allocation3 + $0x180] sm:$0xff]  ;;  %v590_v35 = vmul.f32 %v1670_v0, %v76_v30 }
  0x18   :  { %1070 = vst [vmem:[#allocation6 + $0x78] sm:$0xff] %v558_v34  ;;  %v78_v34 = vld [vmem:[#allocation3 + $0x188] sm:$0xff]  ;;  %v591_v37 = vmul.f32 %v1670_v0, %v77_v32 }
  0x19   :  { %1071 = vst [vmem:[#allocation6 + $0x80] sm:$0xff] %v559_v36  ;;  %v79_v36 = vld [vmem:[#allocation3 + $0x190] sm:$0xff]  ;;  %v592_v39 = vmul.f32 %v1670_v0, %v78_v34 }
  0x1a   :  { %1072 = vst [vmem:[#allocation6 + $0x88] sm:$0xff] %v560_v38  ;;  %v80_v38 = vld [vmem:[#allocation3 + $0x198] sm:$0xff]  ;;  %v593_v41 = vmul.f32 %v1670_v0, %v79_v36 }
  0x1b   :  { %1073 = vst [vmem:[#allocation6 + $0x90] sm:$0xff] %v561_v40  ;;  %v81_v40 = vld [vmem:[#allocation3 + $0x1a0] sm:$0xff]  ;;  %v594_v43 = vmul.f32 %v1670_v0, %v80_v38 }
  0x1c   :  { %1074 = vst [vmem:[#allocation6 + $0x98] sm:$0xff] %v562_v42  ;;  %v82_v42 = vld [vmem:[#allocation3 + $0x1a8] sm:$0xff]  ;;  %v595_v45 = vmul.f32 %v1670_v0, %v81_v40 }
  0x1d   :  { %1075 = vst [vmem:[#allocation6 + $0xa0] sm:$0xff] %v563_v44  ;;  %v83_v44 = vld [vmem:[#allocation3 + $0x1b0] sm:$0xff]  ;;  %v596_v47 = vmul.f32 %v1670_v0, %v82_v42 }
  0x1e   :  { %1076 = vst [vmem:[#allocation6 + $0xa8] sm:$0xff] %v564_v46  ;;  %v84_v46 = vld [vmem:[#allocation3 + $0x1b8] sm:$0xff]  ;;  %v597_v49 = vmul.f32 %v1670_v0, %v83_v44 }
  0x1f   :  { %1077 = vst [vmem:[#allocation6 + $0xb0] sm:$0xff] %v565_v48  ;;  %v85_v48 = vld [vmem:[#allocation3 + $0x1c0] sm:$0xff]  ;;  %v598_v51 = vmul.f32 %v1670_v0, %v84_v46 }
  0x20   :  { %1078 = vst [vmem:[#allocation6 + $0xb8] sm:$0xff] %v566_v50  ;;  %v86_v50 = vld [vmem:[#allocation3 + $0x1c8] sm:$0xff]  ;;  %v599_v53 = vmul.f32 %v1670_v0, %v85_v48 }
  0x21   :  { %1079 = vst [vmem:[#allocation6 + $0xc0] sm:$0xff] %v567_v52  ;;  %v87_v52 = vld [vmem:[#allocation3 + $0x1d0] sm:$0xff]  ;;  %v600_v55 = vmul.f32 %v1670_v0, %v86_v50 }
  0x22   :  { %1080 = vst [vmem:[#allocation6 + $0xc8] sm:$0xff] %v568_v54  ;;  %v88_v54 = vld [vmem:[#allocation3 + $0x1d8] sm:$0xff]  ;;  %v601_v57 = vmul.f32 %v1670_v0, %v87_v52 }
  0x23   :  { %1081 = vst [vmem:[#allocation6 + $0xd0] sm:$0xff] %v569_v56  ;;  %v89_v56 = vld [vmem:[#allocation3 + $0x1e0] sm:$0xff]  ;;  %v602_v59 = vmul.f32 %v1670_v0, %v88_v54 }
  0x24   :  { %1082 = vst [vmem:[#allocation6 + $0xd8] sm:$0xff] %v570_v58  ;;  %v90_v58 = vld [vmem:[#allocation3 + $0x1e8] sm:$0xff]  ;;  %v603_v61 = vmul.f32 %v1670_v0, %v89_v56 }
  0x25   :  { %1083 = vst [vmem:[#allocation6 + $0xe0] sm:$0xff] %v571_v60  ;;  %v91_v60 = vld [vmem:[#allocation3 + $0x1f0] sm:$0xff]  ;;  %v604_v63 = vmul.f32 %v1670_v0, %v90_v58 }
  0x26   :  { %1084 = vst [vmem:[#allocation6 + $0xe8] sm:$0xff] %v572_v62  ;;  %v92_v62 = vld [vmem:[#allocation3 + $0x1f8] sm:$0xff]  ;;  %v605_v2 = vmul.f32 %v1670_v0, %v91_v60 }
  0x27   :  { %1085 = vst [vmem:[#allocation6 + $0xf0] sm:$0xff] %v573_v1  ;;  %v93_v1 = vld [vmem:[#allocation3 + $0x200] sm:$0xff]  ;;  %v606_v4 = vmul.f32 %v1670_v0, %v92_v62 }
  0x28   :  { %1086 = vst [vmem:[#allocation6 + $0xf8] sm:$0xff] %v574_v3  ;;  %v94_v3 = vld [vmem:[#allocation3 + $0x208] sm:$0xff]  ;;  %v607_v6 = vmul.f32 %v1670_v0, %v93_v1 }
  0x29   :  { %1087 = vst [vmem:[#allocation6 + $0x100] sm:$0xff] %v575_v5  ;;  %v95_v5 = vld [vmem:[#allocation3 + $0x210] sm:$0xff]  ;;  %v608_v8 = vmul.f32 %v1670_v0, %v94_v3 }
  0x2a   :  { %1088 = vst [vmem:[#allocation6 + $0x108] sm:$0xff] %v576_v7  ;;  %v96_v7 = vld [vmem:[#allocation3 + $0x218] sm:$0xff]  ;;  %v609_v10 = vmul.f32 %v1670_v0, %v95_v5 }
  0x2b   :  { %1089 = vst [vmem:[#allocation6 + $0x110] sm:$0xff] %v577_v9  ;;  %v97_v9 = vld [vmem:[#allocation3 + $0x220] sm:$0xff]  ;;  %v610_v12 = vmul.f32 %v1670_v0, %v96_v7 }
  0x2c   :  { %1090 = vst [vmem:[#allocation6 + $0x118] sm:$0xff] %v578_v11  ;;  %v98_v11 = vld [vmem:[#allocation3 + $0x228] sm:$0xff]  ;;  %v611_v14 = vmul.f32 %v1670_v0, %v97_v9 }
  0x2d   :  { %1091 = vst [vmem:[#allocation6 + $0x120] sm:$0xff] %v579_v13  ;;  %v99_v13 = vld [vmem:[#allocation3 + $0x230] sm:$0xff]  ;;  %v612_v16 = vmul.f32 %v1670_v0, %v98_v11 }
  0x2e   :  { %1092 = vst [vmem:[#allocation6 + $0x128] sm:$0xff] %v580_v15  ;;  %v100_v15 = vld [vmem:[#allocation3 + $0x238] sm:$0xff]  ;;  %v613_v18 = vmul.f32 %v1670_v0, %v99_v13 }
  0x2f   :  { %1093 = vst [vmem:[#allocation6 + $0x130] sm:$0xff] %v581_v17  ;;  %v101_v17 = vld [vmem:[#allocation3 + $0x240] sm:$0xff]  ;;  %v614_v20 = vmul.f32 %v1670_v0, %v100_v15 }
  0x30   :  { %1094 = vst [vmem:[#allocation6 + $0x138] sm:$0xff] %v582_v19  ;;  %v102_v19 = vld [vmem:[#allocation3 + $0x248] sm:$0xff]  ;;  %v615_v22 = vmul.f32 %v1670_v0, %v101_v17 }
  0x31   :  { %1095 = vst [vmem:[#allocation6 + $0x140] sm:$0xff] %v583_v21  ;;  %v103_v21 = vld [vmem:[#allocation3 + $0x250] sm:$0xff]  ;;  %v616_v24 = vmul.f32 %v1670_v0, %v102_v19 }
  0x32   :  { %1096 = vst [vmem:[#allocation6 + $0x148] sm:$0xff] %v584_v23  ;;  %v104_v23 = vld [vmem:[#allocation3 + $0x258] sm:$0xff]  ;;  %v617_v26 = vmul.f32 %v1670_v0, %v103_v21 }
  0x33   :  { %1097 = vst [vmem:[#allocation6 + $0x150] sm:$0xff] %v585_v25  ;;  %v105_v25 = vld [vmem:[#allocation3 + $0x260] sm:$0xff]  ;;  %v618_v28 = vmul.f32 %v1670_v0, %v104_v23 }
  0x34   :  { %1098 = vst [vmem:[#allocation6 + $0x158] sm:$0xff] %v586_v27  ;;  %v106_v27 = vld [vmem:[#allocation3 + $0x268] sm:$0xff]  ;;  %v619_v30 = vmul.f32 %v1670_v0, %v105_v25 }
  0x35   :  { %1099 = vst [vmem:[#allocation6 + $0x160] sm:$0xff] %v587_v29  ;;  %v107_v29 = vld [vmem:[#allocation3 + $0x270] sm:$0xff]  ;;  %v620_v32 = vmul.f32 %v1670_v0, %v106_v27 }
  0x36   :  { %1100 = vst [vmem:[#allocation6 + $0x168] sm:$0xff] %v588_v31  ;;  %v108_v31 = vld [vmem:[#allocation3 + $0x278] sm:$0xff]  ;;  %v621_v34 = vmul.f32 %v1670_v0, %v107_v29 }
  0x37   :  { %1101 = vst [vmem:[#allocation6 + $0x170] sm:$0xff] %v589_v33  ;;  %v109_v33 = vld [vmem:[#allocation3 + $0x280] sm:$0xff]  ;;  %v622_v36 = vmul.f32 %v1670_v0, %v108_v31 }
  0x38   :  { %1102 = vst [vmem:[#allocation6 + $0x178] sm:$0xff] %v590_v35  ;;  %v110_v35 = vld [vmem:[#allocation3 + $0x288] sm:$0xff]  ;;  %v623_v38 = vmul.f32 %v1670_v0, %v109_v33 }
  0x39   :  { %1103 = vst [vmem:[#allocation6 + $0x180] sm:$0xff] %v591_v37  ;;  %v111_v37 = vld [vmem:[#allocation3 + $0x290] sm:$0xff]  ;;  %v624_v40 = vmul.f32 %v1670_v0, %v110_v35 }
  0x3a   :  { %1104 = vst [vmem:[#allocation6 + $0x188] sm:$0xff] %v592_v39  ;;  %v112_v39 = vld [vmem:[#allocation3 + $0x298] sm:$0xff]  ;;  %v625_v42 = vmul.f32 %v1670_v0, %v111_v37 }
  0x3b   :  { %1105 = vst [vmem:[#allocation6 + $0x190] sm:$0xff] %v593_v41  ;;  %v113_v41 = vld [vmem:[#allocation3 + $0x2a0] sm:$0xff]  ;;  %v626_v44 = vmul.f32 %v1670_v0, %v112_v39 }
  0x3c   :  { %1106 = vst [vmem:[#allocation6 + $0x198] sm:$0xff] %v594_v43  ;;  %v114_v43 = vld [vmem:[#allocation3 + $0x2a8] sm:$0xff]  ;;  %v627_v46 = vmul.f32 %v1670_v0, %v113_v41 }
  0x3d   :  { %1107 = vst [vmem:[#allocation6 + $0x1a0] sm:$0xff] %v595_v45  ;;  %v115_v45 = vld [vmem:[#allocation3 + $0x2b0] sm:$0xff]  ;;  %v628_v48 = vmul.f32 %v1670_v0, %v114_v43 }
  0x3e   :  { %1108 = vst [vmem:[#allocation6 + $0x1a8] sm:$0xff] %v596_v47  ;;  %v116_v47 = vld [vmem:[#allocation3 + $0x2b8] sm:$0xff]  ;;  %v629_v50 = vmul.f32 %v1670_v0, %v115_v45 }
  0x3f   :  { %1109 = vst [vmem:[#allocation6 + $0x1b0] sm:$0xff] %v597_v49  ;;  %v117_v49 = vld [vmem:[#allocation3 + $0x2c0] sm:$0xff]  ;;  %v630_v52 = vmul.f32 %v1670_v0, %v116_v47 }
  0x40   :  { %1110 = vst [vmem:[#allocation6 + $0x1b8] sm:$0xff] %v598_v51  ;;  %v118_v51 = vld [vmem:[#allocation3 + $0x2c8] sm:$0xff]  ;;  %v631_v54 = vmul.f32 %v1670_v0, %v117_v49 }
  0x41   :  { %1111 = vst [vmem:[#allocation6 + $0x1c0] sm:$0xff] %v599_v53  ;;  %v119_v53 = vld [vmem:[#allocation3 + $0x2d0] sm:$0xff]  ;;  %v632_v56 = vmul.f32 %v1670_v0, %v118_v51 }
  0x42   :  { %1112 = vst [vmem:[#allocation6 + $0x1c8] sm:$0xff] %v600_v55  ;;  %v120_v55 = vld [vmem:[#allocation3 + $0x2d8] sm:$0xff]  ;;  %v633_v58 = vmul.f32 %v1670_v0, %v119_v53 }
  0x43   :  { %1113 = vst [vmem:[#allocation6 + $0x1d0] sm:$0xff] %v601_v57  ;;  %v121_v57 = vld [vmem:[#allocation3 + $0x2e0] sm:$0xff]  ;;  %v634_v60 = vmul.f32 %v1670_v0, %v120_v55 }
  0x44   :  { %1114 = vst [vmem:[#allocation6 + $0x1d8] sm:$0xff] %v602_v59  ;;  %v122_v59 = vld [vmem:[#allocation3 + $0x2e8] sm:$0xff]  ;;  %v635_v62 = vmul.f32 %v1670_v0, %v121_v57 }
  0x45   :  { %1115 = vst [vmem:[#allocation6 + $0x1e0] sm:$0xff] %v603_v61  ;;  %v123_v61 = vld [vmem:[#allocation3 + $0x2f0] sm:$0xff]  ;;  %v636_v1 = vmul.f32 %v1670_v0, %v122_v59 }
  0x46   :  { %1116 = vst [vmem:[#allocation6 + $0x1e8] sm:$0xff] %v604_v63  ;;  %v124_v63 = vld [vmem:[#allocation3 + $0x2f8] sm:$0xff]  ;;  %v637_v3 = vmul.f32 %v1670_v0, %v123_v61 }
  0x47   :  { %1117 = vst [vmem:[#allocation6 + $0x1f0] sm:$0xff] %v605_v2  ;;  %v125_v2 = vld [vmem:[#allocation3 + $0x300] sm:$0xff]  ;;  %v638_v5 = vmul.f32 %v1670_v0, %v124_v63 }
  0x48   :  { %1118 = vst [vmem:[#allocation6 + $0x1f8] sm:$0xff] %v606_v4  ;;  %v126_v4 = vld [vmem:[#allocation3 + $0x308] sm:$0xff]  ;;  %v639_v7 = vmul.f32 %v1670_v0, %v125_v2 }
  0x49   :  { %1119 = vst [vmem:[#allocation6 + $0x200] sm:$0xff] %v607_v6  ;;  %v127_v6 = vld [vmem:[#allocation3 + $0x310] sm:$0xff]  ;;  %v640_v9 = vmul.f32 %v1670_v0, %v126_v4 }
  0x4a   :  { %1120 = vst [vmem:[#allocation6 + $0x208] sm:$0xff] %v608_v8  ;;  %v128_v8 = vld [vmem:[#allocation3 + $0x318] sm:$0xff]  ;;  %v641_v11 = vmul.f32 %v1670_v0, %v127_v6 }
  0x4b   :  { %1121 = vst [vmem:[#allocation6 + $0x210] sm:$0xff] %v609_v10  ;;  %v129_v10 = vld [vmem:[#allocation3 + $0x320] sm:$0xff]  ;;  %v642_v13 = vmul.f32 %v1670_v0, %v128_v8 }
  0x4c   :  { %1122 = vst [vmem:[#allocation6 + $0x218] sm:$0xff] %v610_v12  ;;  %v130_v12 = vld [vmem:[#allocation3 + $0x328] sm:$0xff]  ;;  %v643_v15 = vmul.f32 %v1670_v0, %v129_v10 }
  0x4d   :  { %1123 = vst [vmem:[#allocation6 + $0x220] sm:$0xff] %v611_v14  ;;  %v131_v14 = vld [vmem:[#allocation3 + $0x330] sm:$0xff]  ;;  %v644_v17 = vmul.f32 %v1670_v0, %v130_v12 }
  0x4e   :  { %1124 = vst [vmem:[#allocation6 + $0x228] sm:$0xff] %v612_v16  ;;  %v132_v16 = vld [vmem:[#allocation3 + $0x338] sm:$0xff]  ;;  %v645_v19 = vmul.f32 %v1670_v0, %v131_v14 }
  0x4f   :  { %1125 = vst [vmem:[#allocation6 + $0x230] sm:$0xff] %v613_v18  ;;  %v133_v18 = vld [vmem:[#allocation3 + $0x340] sm:$0xff]  ;;  %v646_v21 = vmul.f32 %v1670_v0, %v132_v16 }
  0x50   :  { %1126 = vst [vmem:[#allocation6 + $0x238] sm:$0xff] %v614_v20  ;;  %v134_v20 = vld [vmem:[#allocation3 + $0x348] sm:$0xff]  ;;  %v647_v23 = vmul.f32 %v1670_v0, %v133_v18 }
  0x51   :  { %1127 = vst [vmem:[#allocation6 + $0x240] sm:$0xff] %v615_v22  ;;  %v135_v22 = vld [vmem:[#allocation3 + $0x350] sm:$0xff]  ;;  %v648_v25 = vmul.f32 %v1670_v0, %v134_v20 }
  0x52   :  { %1128 = vst [vmem:[#allocation6 + $0x248] sm:$0xff] %v616_v24  ;;  %v136_v24 = vld [vmem:[#allocation3 + $0x358] sm:$0xff]  ;;  %v649_v27 = vmul.f32 %v1670_v0, %v135_v22 }
  0x53   :  { %1129 = vst [vmem:[#allocation6 + $0x250] sm:$0xff] %v617_v26  ;;  %v137_v26 = vld [vmem:[#allocation3 + $0x360] sm:$0xff]  ;;  %v650_v29 = vmul.f32 %v1670_v0, %v136_v24 }
  0x54   :  { %1130 = vst [vmem:[#allocation6 + $0x258] sm:$0xff] %v618_v28  ;;  %v138_v28 = vld [vmem:[#allocation3 + $0x368] sm:$0xff]  ;;  %v651_v31 = vmul.f32 %v1670_v0, %v137_v26 }
  0x55   :  { %1131 = vst [vmem:[#allocation6 + $0x260] sm:$0xff] %v619_v30  ;;  %v139_v30 = vld [vmem:[#allocation3 + $0x370] sm:$0xff]  ;;  %v652_v33 = vmul.f32 %v1670_v0, %v138_v28 }
  0x56   :  { %1132 = vst [vmem:[#allocation6 + $0x268] sm:$0xff] %v620_v32  ;;  %v140_v32 = vld [vmem:[#allocation3 + $0x378] sm:$0xff]  ;;  %v653_v35 = vmul.f32 %v1670_v0, %v139_v30 }
  0x57   :  { %1133 = vst [vmem:[#allocation6 + $0x270] sm:$0xff] %v621_v34  ;;  %v141_v34 = vld [vmem:[#allocation3 + $0x380] sm:$0xff]  ;;  %v654_v37 = vmul.f32 %v1670_v0, %v140_v32 }
  0x58   :  { %1134 = vst [vmem:[#allocation6 + $0x278] sm:$0xff] %v622_v36  ;;  %v142_v36 = vld [vmem:[#allocation3 + $0x388] sm:$0xff]  ;;  %v655_v39 = vmul.f32 %v1670_v0, %v141_v34 }
  0x59   :  { %1135 = vst [vmem:[#allocation6 + $0x280] sm:$0xff] %v623_v38  ;;  %v143_v38 = vld [vmem:[#allocation3 + $0x390] sm:$0xff]  ;;  %v656_v41 = vmul.f32 %v1670_v0, %v142_v36 }
  0x5a   :  { %1136 = vst [vmem:[#allocation6 + $0x288] sm:$0xff] %v624_v40  ;;  %v144_v40 = vld [vmem:[#allocation3 + $0x398] sm:$0xff]  ;;  %v657_v43 = vmul.f32 %v1670_v0, %v143_v38 }
  0x5b   :  { %1137 = vst [vmem:[#allocation6 + $0x290] sm:$0xff] %v625_v42  ;;  %v145_v42 = vld [vmem:[#allocation3 + $0x3a0] sm:$0xff]  ;;  %v658_v45 = vmul.f32 %v1670_v0, %v144_v40 }
  0x5c   :  { %1138 = vst [vmem:[#allocation6 + $0x298] sm:$0xff] %v626_v44  ;;  %v146_v44 = vld [vmem:[#allocation3 + $0x3a8] sm:$0xff]  ;;  %v659_v47 = vmul.f32 %v1670_v0, %v145_v42 }
  0x5d   :  { %1139 = vst [vmem:[#allocation6 + $0x2a0] sm:$0xff] %v627_v46  ;;  %v147_v46 = vld [vmem:[#allocation3 + $0x3b0] sm:$0xff]  ;;  %v660_v49 = vmul.f32 %v1670_v0, %v146_v44 }
  0x5e   :  { %1140 = vst [vmem:[#allocation6 + $0x2a8] sm:$0xff] %v628_v48  ;;  %v148_v48 = vld [vmem:[#allocation3 + $0x3b8] sm:$0xff]  ;;  %v661_v51 = vmul.f32 %v1670_v0, %v147_v46 }
  0x5f   :  { %1141 = vst [vmem:[#allocation6 + $0x2b0] sm:$0xff] %v629_v50  ;;  %v149_v50 = vld [vmem:[#allocation3 + $0x3c0] sm:$0xff]  ;;  %v662_v53 = vmul.f32 %v1670_v0, %v148_v48 }
  0x60   :  { %1142 = vst [vmem:[#allocation6 + $0x2b8] sm:$0xff] %v630_v52  ;;  %v150_v52 = vld [vmem:[#allocation3 + $0x3c8] sm:$0xff]  ;;  %v663_v55 = vmul.f32 %v1670_v0, %v149_v50 }
  0x61   :  { %1143 = vst [vmem:[#allocation6 + $0x2c0] sm:$0xff] %v631_v54  ;;  %v151_v54 = vld [vmem:[#allocation3 + $0x3d0] sm:$0xff]  ;;  %v664_v57 = vmul.f32 %v1670_v0, %v150_v52 }
  0x62   :  { %1144 = vst [vmem:[#allocation6 + $0x2c8] sm:$0xff] %v632_v56  ;;  %v152_v56 = vld [vmem:[#allocation3 + $0x3d8] sm:$0xff]  ;;  %v665_v59 = vmul.f32 %v1670_v0, %v151_v54 }
  0x63   :  { %1145 = vst [vmem:[#allocation6 + $0x2d0] sm:$0xff] %v633_v58  ;;  %v153_v58 = vld [vmem:[#allocation3 + $0x3e0] sm:$0xff]  ;;  %v666_v61 = vmul.f32 %v1670_v0, %v152_v56 }
  0x64   :  { %1146 = vst [vmem:[#allocation6 + $0x2d8] sm:$0xff] %v634_v60  ;;  %v154_v60 = vld [vmem:[#allocation3 + $0x3e8] sm:$0xff]  ;;  %v667_v63 = vmul.f32 %v1670_v0, %v153_v58 }
  0x65   :  { %1147 = vst [vmem:[#allocation6 + $0x2e0] sm:$0xff] %v635_v62  ;;  %v155_v62 = vld [vmem:[#allocation3 + $0x3f0] sm:$0xff]  ;;  %v668_v2 = vmul.f32 %v1670_v0, %v154_v60 }
  0x66   :  { %1148 = vst [vmem:[#allocation6 + $0x2e8] sm:$0xff] %v636_v1  ;;  %v156_v1 = vld [vmem:[#allocation3 + $0x3f8] sm:$0xff]  ;;  %v669_v4 = vmul.f32 %v1670_v0, %v155_v62 }
  0x67   :  { %1149 = vst [vmem:[#allocation6 + $0x2f0] sm:$0xff] %v637_v3  ;;  %v157_v3 = vld [vmem:[#allocation3 + $0x400] sm:$0xff]  ;;  %v670_v6 = vmul.f32 %v1670_v0, %v156_v1 }
  0x68   :  { %1150 = vst [vmem:[#allocation6 + $0x2f8] sm:$0xff] %v638_v5  ;;  %v158_v5 = vld [vmem:[#allocation3 + $0x408] sm:$0xff]  ;;  %v671_v8 = vmul.f32 %v1670_v0, %v157_v3 }
  0x69   :  { %1151 = vst [vmem:[#allocation6 + $0x300] sm:$0xff] %v639_v7  ;;  %v159_v7 = vld [vmem:[#allocation3 + $0x410] sm:$0xff]  ;;  %v672_v10 = vmul.f32 %v1670_v0, %v158_v5 }
  0x6a   :  { %1152 = vst [vmem:[#allocation6 + $0x308] sm:$0xff] %v640_v9  ;;  %v160_v9 = vld [vmem:[#allocation3 + $0x418] sm:$0xff]  ;;  %v673_v12 = vmul.f32 %v1670_v0, %v159_v7 }
  0x6b   :  { %1153 = vst [vmem:[#allocation6 + $0x310] sm:$0xff] %v641_v11  ;;  %v161_v11 = vld [vmem:[#allocation3 + $0x420] sm:$0xff]  ;;  %v674_v14 = vmul.f32 %v1670_v0, %v160_v9 }
  0x6c   :  { %1154 = vst [vmem:[#allocation6 + $0x318] sm:$0xff] %v642_v13  ;;  %v162_v13 = vld [vmem:[#allocation3 + $0x428] sm:$0xff]  ;;  %v675_v16 = vmul.f32 %v1670_v0, %v161_v11 }
  0x6d   :  { %1155 = vst [vmem:[#allocation6 + $0x320] sm:$0xff] %v643_v15  ;;  %v163_v15 = vld [vmem:[#allocation3 + $0x430] sm:$0xff]  ;;  %v676_v18 = vmul.f32 %v1670_v0, %v162_v13 }
  0x6e   :  { %1156 = vst [vmem:[#allocation6 + $0x328] sm:$0xff] %v644_v17  ;;  %v164_v17 = vld [vmem:[#allocation3 + $0x438] sm:$0xff]  ;;  %v677_v20 = vmul.f32 %v1670_v0, %v163_v15 }
  0x6f   :  { %1157 = vst [vmem:[#allocation6 + $0x330] sm:$0xff] %v645_v19  ;;  %v165_v19 = vld [vmem:[#allocation3 + $0x440] sm:$0xff]  ;;  %v678_v22 = vmul.f32 %v1670_v0, %v164_v17 }
  0x70   :  { %1158 = vst [vmem:[#allocation6 + $0x338] sm:$0xff] %v646_v21  ;;  %v166_v21 = vld [vmem:[#allocation3 + $0x448] sm:$0xff]  ;;  %v679_v24 = vmul.f32 %v1670_v0, %v165_v19 }
  0x71   :  { %1159 = vst [vmem:[#allocation6 + $0x340] sm:$0xff] %v647_v23  ;;  %v167_v23 = vld [vmem:[#allocation3 + $0x450] sm:$0xff]  ;;  %v680_v26 = vmul.f32 %v1670_v0, %v166_v21 }
  0x72   :  { %1160 = vst [vmem:[#allocation6 + $0x348] sm:$0xff] %v648_v25  ;;  %v168_v25 = vld [vmem:[#allocation3 + $0x458] sm:$0xff]  ;;  %v681_v28 = vmul.f32 %v1670_v0, %v167_v23 }
  0x73   :  { %1161 = vst [vmem:[#allocation6 + $0x350] sm:$0xff] %v649_v27  ;;  %v169_v27 = vld [vmem:[#allocation3 + $0x460] sm:$0xff]  ;;  %v682_v30 = vmul.f32 %v1670_v0, %v168_v25 }
  0x74   :  { %1162 = vst [vmem:[#allocation6 + $0x358] sm:$0xff] %v650_v29  ;;  %v170_v29 = vld [vmem:[#allocation3 + $0x468] sm:$0xff]  ;;  %v683_v32 = vmul.f32 %v1670_v0, %v169_v27 }
  0x75   :  { %1163 = vst [vmem:[#allocation6 + $0x360] sm:$0xff] %v651_v31  ;;  %v171_v31 = vld [vmem:[#allocation3 + $0x470] sm:$0xff]  ;;  %v684_v34 = vmul.f32 %v1670_v0, %v170_v29 }
  0x76   :  { %1164 = vst [vmem:[#allocation6 + $0x368] sm:$0xff] %v652_v33  ;;  %v172_v33 = vld [vmem:[#allocation3 + $0x478] sm:$0xff]  ;;  %v685_v36 = vmul.f32 %v1670_v0, %v171_v31 }
  0x77   :  { %1165 = vst [vmem:[#allocation6 + $0x370] sm:$0xff] %v653_v35  ;;  %v173_v35 = vld [vmem:[#allocation3 + $0x480] sm:$0xff]  ;;  %v686_v38 = vmul.f32 %v1670_v0, %v172_v33 }
  0x78   :  { %1166 = vst [vmem:[#allocation6 + $0x378] sm:$0xff] %v654_v37  ;;  %v174_v37 = vld [vmem:[#allocation3 + $0x488] sm:$0xff]  ;;  %v687_v40 = vmul.f32 %v1670_v0, %v173_v35 }
  0x79   :  { %1167 = vst [vmem:[#allocation6 + $0x380] sm:$0xff] %v655_v39  ;;  %v175_v39 = vld [vmem:[#allocation3 + $0x490] sm:$0xff]  ;;  %v688_v42 = vmul.f32 %v1670_v0, %v174_v37 }
  0x7a   :  { %1168 = vst [vmem:[#allocation6 + $0x388] sm:$0xff] %v656_v41  ;;  %v176_v41 = vld [vmem:[#allocation3 + $0x498] sm:$0xff]  ;;  %v689_v44 = vmul.f32 %v1670_v0, %v175_v39 }
  0x7b   :  { %1169 = vst [vmem:[#allocation6 + $0x390] sm:$0xff] %v657_v43  ;;  %v177_v43 = vld [vmem:[#allocation3 + $0x4a0] sm:$0xff]  ;;  %v690_v46 = vmul.f32 %v1670_v0, %v176_v41 }
  0x7c   :  { %1170 = vst [vmem:[#allocation6 + $0x398] sm:$0xff] %v658_v45  ;;  %v178_v45 = vld [vmem:[#allocation3 + $0x4a8] sm:$0xff]  ;;  %v691_v48 = vmul.f32 %v1670_v0, %v177_v43 }
  0x7d   :  { %1171 = vst [vmem:[#allocation6 + $0x3a0] sm:$0xff] %v659_v47  ;;  %v179_v47 = vld [vmem:[#allocation3 + $0x4b0] sm:$0xff]  ;;  %v692_v50 = vmul.f32 %v1670_v0, %v178_v45 }
  0x7e   :  { %1172 = vst [vmem:[#allocation6 + $0x3a8] sm:$0xff] %v660_v49  ;;  %v180_v49 = vld [vmem:[#allocation3 + $0x4b8] sm:$0xff]  ;;  %v693_v52 = vmul.f32 %v1670_v0, %v179_v47 }
  0x7f   :  { %1173 = vst [vmem:[#allocation6 + $0x3b0] sm:$0xff] %v661_v51  ;;  %v181_v51 = vld [vmem:[#allocation3 + $0x4c0] sm:$0xff]  ;;  %v694_v54 = vmul.f32 %v1670_v0, %v180_v49 }
  0x80   :  { %1174 = vst [vmem:[#allocation6 + $0x3b8] sm:$0xff] %v662_v53  ;;  %v182_v53 = vld [vmem:[#allocation3 + $0x4c8] sm:$0xff]  ;;  %v695_v56 = vmul.f32 %v1670_v0, %v181_v51 }
  0x81   :  { %1175 = vst [vmem:[#allocation6 + $0x3c0] sm:$0xff] %v663_v55  ;;  %v183_v55 = vld [vmem:[#allocation3 + $0x4d0] sm:$0xff]  ;;  %v696_v58 = vmul.f32 %v1670_v0, %v182_v53 }
  0x82   :  { %1176 = vst [vmem:[#allocation6 + $0x3c8] sm:$0xff] %v664_v57  ;;  %v184_v57 = vld [vmem:[#allocation3 + $0x4d8] sm:$0xff]  ;;  %v697_v60 = vmul.f32 %v1670_v0, %v183_v55 }
  0x83   :  { %1177 = vst [vmem:[#allocation6 + $0x3d0] sm:$0xff] %v665_v59  ;;  %v185_v59 = vld [vmem:[#allocation3 + $0x4e0] sm:$0xff]  ;;  %v698_v62 = vmul.f32 %v1670_v0, %v184_v57 }
  0x84   :  { %1178 = vst [vmem:[#allocation6 + $0x3d8] sm:$0xff] %v666_v61  ;;  %v186_v61 = vld [vmem:[#allocation3 + $0x4e8] sm:$0xff]  ;;  %v699_v1 = vmul.f32 %v1670_v0, %v185_v59 }
  0x85   :  { %1179 = vst [vmem:[#allocation6 + $0x3e0] sm:$0xff] %v667_v63  ;;  %v187_v63 = vld [vmem:[#allocation3 + $0x4f0] sm:$0xff]  ;;  %v700_v3 = vmul.f32 %v1670_v0, %v186_v61 }
  0x86   :  { %1180 = vst [vmem:[#allocation6 + $0x3e8] sm:$0xff] %v668_v2  ;;  %v188_v2 = vld [vmem:[#allocation3 + $0x4f8] sm:$0xff]  ;;  %v701_v5 = vmul.f32 %v1670_v0, %v187_v63 }
  0x87   :  { %1181 = vst [vmem:[#allocation6 + $0x3f0] sm:$0xff] %v669_v4  ;;  %v189_v4 = vld [vmem:[#allocation3 + $0x500] sm:$0xff]  ;;  %v702_v7 = vmul.f32 %v1670_v0, %v188_v2 }
  0x88   :  { %1182 = vst [vmem:[#allocation6 + $0x3f8] sm:$0xff] %v670_v6  ;;  %v190_v6 = vld [vmem:[#allocation3 + $0x508] sm:$0xff]  ;;  %v703_v9 = vmul.f32 %v1670_v0, %v189_v4 }
  0x89   :  { %1183 = vst [vmem:[#allocation6 + $0x400] sm:$0xff] %v671_v8  ;;  %v191_v8 = vld [vmem:[#allocation3 + $0x510] sm:$0xff]  ;;  %v704_v11 = vmul.f32 %v1670_v0, %v190_v6 }
  0x8a   :  { %1184 = vst [vmem:[#allocation6 + $0x408] sm:$0xff] %v672_v10  ;;  %v192_v10 = vld [vmem:[#allocation3 + $0x518] sm:$0xff]  ;;  %v705_v13 = vmul.f32 %v1670_v0, %v191_v8 }
  0x8b   :  { %1185 = vst [vmem:[#allocation6 + $0x410] sm:$0xff] %v673_v12  ;;  %v193_v12 = vld [vmem:[#allocation3 + $0x520] sm:$0xff]  ;;  %v706_v15 = vmul.f32 %v1670_v0, %v192_v10 }
  0x8c   :  { %1186 = vst [vmem:[#allocation6 + $0x418] sm:$0xff] %v674_v14  ;;  %v194_v14 = vld [vmem:[#allocation3 + $0x528] sm:$0xff]  ;;  %v707_v17 = vmul.f32 %v1670_v0, %v193_v12 }
  0x8d   :  { %1187 = vst [vmem:[#allocation6 + $0x420] sm:$0xff] %v675_v16  ;;  %v195_v16 = vld [vmem:[#allocation3 + $0x530] sm:$0xff]  ;;  %v708_v19 = vmul.f32 %v1670_v0, %v194_v14 }
  0x8e   :  { %1188 = vst [vmem:[#allocation6 + $0x428] sm:$0xff] %v676_v18  ;;  %v196_v18 = vld [vmem:[#allocation3 + $0x538] sm:$0xff]  ;;  %v709_v21 = vmul.f32 %v1670_v0, %v195_v16 }
  0x8f   :  { %1189 = vst [vmem:[#allocation6 + $0x430] sm:$0xff] %v677_v20  ;;  %v197_v20 = vld [vmem:[#allocation3 + $0x540] sm:$0xff]  ;;  %v710_v23 = vmul.f32 %v1670_v0, %v196_v18 }
  0x90   :  { %1190 = vst [vmem:[#allocation6 + $0x438] sm:$0xff] %v678_v22  ;;  %v198_v22 = vld [vmem:[#allocation3 + $0x548] sm:$0xff]  ;;  %v711_v25 = vmul.f32 %v1670_v0, %v197_v20 }
  0x91   :  { %1191 = vst [vmem:[#allocation6 + $0x440] sm:$0xff] %v679_v24  ;;  %v199_v24 = vld [vmem:[#allocation3 + $0x550] sm:$0xff]  ;;  %v712_v27 = vmul.f32 %v1670_v0, %v198_v22 }
  0x92   :  { %1192 = vst [vmem:[#allocation6 + $0x448] sm:$0xff] %v680_v26  ;;  %v200_v26 = vld [vmem:[#allocation3 + $0x558] sm:$0xff]  ;;  %v713_v29 = vmul.f32 %v1670_v0, %v199_v24 }
  0x93   :  { %1193 = vst [vmem:[#allocation6 + $0x450] sm:$0xff] %v681_v28  ;;  %v201_v28 = vld [vmem:[#allocation3 + $0x560] sm:$0xff]  ;;  %v714_v31 = vmul.f32 %v1670_v0, %v200_v26 }
  0x94   :  { %1194 = vst [vmem:[#allocation6 + $0x458] sm:$0xff] %v682_v30  ;;  %v202_v30 = vld [vmem:[#allocation3 + $0x568] sm:$0xff]  ;;  %v715_v33 = vmul.f32 %v1670_v0, %v201_v28 }
  0x95   :  { %1195 = vst [vmem:[#allocation6 + $0x460] sm:$0xff] %v683_v32  ;;  %v203_v32 = vld [vmem:[#allocation3 + $0x570] sm:$0xff]  ;;  %v716_v35 = vmul.f32 %v1670_v0, %v202_v30 }
  0x96   :  { %1196 = vst [vmem:[#allocation6 + $0x468] sm:$0xff] %v684_v34  ;;  %v204_v34 = vld [vmem:[#allocation3 + $0x578] sm:$0xff]  ;;  %v717_v37 = vmul.f32 %v1670_v0, %v203_v32 }
  0x97   :  { %1197 = vst [vmem:[#allocation6 + $0x470] sm:$0xff] %v685_v36  ;;  %v205_v36 = vld [vmem:[#allocation3 + $0x580] sm:$0xff]  ;;  %v718_v39 = vmul.f32 %v1670_v0, %v204_v34 }
  0x98   :  { %1198 = vst [vmem:[#allocation6 + $0x478] sm:$0xff] %v686_v38  ;;  %v206_v38 = vld [vmem:[#allocation3 + $0x588] sm:$0xff]  ;;  %v719_v41 = vmul.f32 %v1670_v0, %v205_v36 }
  0x99   :  { %1199 = vst [vmem:[#allocation6 + $0x480] sm:$0xff] %v687_v40  ;;  %v207_v40 = vld [vmem:[#allocation3 + $0x590] sm:$0xff]  ;;  %v720_v43 = vmul.f32 %v1670_v0, %v206_v38 }
  0x9a   :  { %1200 = vst [vmem:[#allocation6 + $0x488] sm:$0xff] %v688_v42  ;;  %v208_v42 = vld [vmem:[#allocation3 + $0x598] sm:$0xff]  ;;  %v721_v45 = vmul.f32 %v1670_v0, %v207_v40 }
  0x9b   :  { %1201 = vst [vmem:[#allocation6 + $0x490] sm:$0xff] %v689_v44  ;;  %v209_v44 = vld [vmem:[#allocation3 + $0x5a0] sm:$0xff]  ;;  %v722_v47 = vmul.f32 %v1670_v0, %v208_v42 }
  0x9c   :  { %1202 = vst [vmem:[#allocation6 + $0x498] sm:$0xff] %v690_v46  ;;  %v210_v46 = vld [vmem:[#allocation3 + $0x5a8] sm:$0xff]  ;;  %v723_v49 = vmul.f32 %v1670_v0, %v209_v44 }
  0x9d   :  { %1203 = vst [vmem:[#allocation6 + $0x4a0] sm:$0xff] %v691_v48  ;;  %v211_v48 = vld [vmem:[#allocation3 + $0x5b0] sm:$0xff]  ;;  %v724_v51 = vmul.f32 %v1670_v0, %v210_v46 }
  0x9e   :  { %1204 = vst [vmem:[#allocation6 + $0x4a8] sm:$0xff] %v692_v50  ;;  %v212_v50 = vld [vmem:[#allocation3 + $0x5b8] sm:$0xff]  ;;  %v725_v53 = vmul.f32 %v1670_v0, %v211_v48 }
  0x9f   :  { %1205 = vst [vmem:[#allocation6 + $0x4b0] sm:$0xff] %v693_v52  ;;  %v213_v52 = vld [vmem:[#allocation3 + $0x5c0] sm:$0xff]  ;;  %v726_v55 = vmul.f32 %v1670_v0, %v212_v50 }
  0xa0   :  { %1206 = vst [vmem:[#allocation6 + $0x4b8] sm:$0xff] %v694_v54  ;;  %v214_v54 = vld [vmem:[#allocation3 + $0x5c8] sm:$0xff]  ;;  %v727_v57 = vmul.f32 %v1670_v0, %v213_v52 }
  0xa1   :  { %1207 = vst [vmem:[#allocation6 + $0x4c0] sm:$0xff] %v695_v56  ;;  %v215_v56 = vld [vmem:[#allocation3 + $0x5d0] sm:$0xff]  ;;  %v728_v59 = vmul.f32 %v1670_v0, %v214_v54 }
  0xa2   :  { %1208 = vst [vmem:[#allocation6 + $0x4c8] sm:$0xff] %v696_v58  ;;  %v216_v58 = vld [vmem:[#allocation3 + $0x5d8] sm:$0xff]  ;;  %v729_v61 = vmul.f32 %v1670_v0, %v215_v56 }
  0xa3   :  { %1209 = vst [vmem:[#allocation6 + $0x4d0] sm:$0xff] %v697_v60  ;;  %v217_v60 = vld [vmem:[#allocation3 + $0x5e0] sm:$0xff]  ;;  %v730_v63 = vmul.f32 %v1670_v0, %v216_v58 }
  0xa4   :  { %1210 = vst [vmem:[#allocation6 + $0x4d8] sm:$0xff] %v698_v62  ;;  %v218_v62 = vld [vmem:[#allocation3 + $0x5e8] sm:$0xff]  ;;  %v731_v2 = vmul.f32 %v1670_v0, %v217_v60 }
  0xa5   :  { %1211 = vst [vmem:[#allocation6 + $0x4e0] sm:$0xff] %v699_v1  ;;  %v219_v1 = vld [vmem:[#allocation3 + $0x5f0] sm:$0xff]  ;;  %v732_v4 = vmul.f32 %v1670_v0, %v218_v62 }
  0xa6   :  { %1212 = vst [vmem:[#allocation6 + $0x4e8] sm:$0xff] %v700_v3  ;;  %v220_v3 = vld [vmem:[#allocation3 + $0x5f8] sm:$0xff]  ;;  %v733_v6 = vmul.f32 %v1670_v0, %v219_v1 }
  0xa7   :  { %1213 = vst [vmem:[#allocation6 + $0x4f0] sm:$0xff] %v701_v5  ;;  %v221_v5 = vld [vmem:[#allocation3 + $0x600] sm:$0xff]  ;;  %v734_v8 = vmul.f32 %v1670_v0, %v220_v3 }
  0xa8   :  { %1214 = vst [vmem:[#allocation6 + $0x4f8] sm:$0xff] %v702_v7  ;;  %v222_v7 = vld [vmem:[#allocation3 + $0x608] sm:$0xff]  ;;  %v735_v10 = vmul.f32 %v1670_v0, %v221_v5 }
  0xa9   :  { %1215 = vst [vmem:[#allocation6 + $0x500] sm:$0xff] %v703_v9  ;;  %v223_v9 = vld [vmem:[#allocation3 + $0x610] sm:$0xff]  ;;  %v736_v12 = vmul.f32 %v1670_v0, %v222_v7 }
  0xaa   :  { %1216 = vst [vmem:[#allocation6 + $0x508] sm:$0xff] %v704_v11  ;;  %v224_v11 = vld [vmem:[#allocation3 + $0x618] sm:$0xff]  ;;  %v737_v14 = vmul.f32 %v1670_v0, %v223_v9 }
  0xab   :  { %1217 = vst [vmem:[#allocation6 + $0x510] sm:$0xff] %v705_v13  ;;  %v225_v13 = vld [vmem:[#allocation3 + $0x620] sm:$0xff]  ;;  %v738_v16 = vmul.f32 %v1670_v0, %v224_v11 }
  0xac   :  { %1218 = vst [vmem:[#allocation6 + $0x518] sm:$0xff] %v706_v15  ;;  %v226_v15 = vld [vmem:[#allocation3 + $0x628] sm:$0xff]  ;;  %v739_v18 = vmul.f32 %v1670_v0, %v225_v13 }
  0xad   :  { %1219 = vst [vmem:[#allocation6 + $0x520] sm:$0xff] %v707_v17  ;;  %v227_v17 = vld [vmem:[#allocation3 + $0x630] sm:$0xff]  ;;  %v740_v20 = vmul.f32 %v1670_v0, %v226_v15 }
  0xae   :  { %1220 = vst [vmem:[#allocation6 + $0x528] sm:$0xff] %v708_v19  ;;  %v228_v19 = vld [vmem:[#allocation3 + $0x638] sm:$0xff]  ;;  %v741_v22 = vmul.f32 %v1670_v0, %v227_v17 }
  0xaf   :  { %1221 = vst [vmem:[#allocation6 + $0x530] sm:$0xff] %v709_v21  ;;  %v229_v21 = vld [vmem:[#allocation3 + $0x640] sm:$0xff]  ;;  %v742_v24 = vmul.f32 %v1670_v0, %v228_v19 }
  0xb0   :  { %1222 = vst [vmem:[#allocation6 + $0x538] sm:$0xff] %v710_v23  ;;  %v230_v23 = vld [vmem:[#allocation3 + $0x648] sm:$0xff]  ;;  %v743_v26 = vmul.f32 %v1670_v0, %v229_v21 }
  0xb1   :  { %1223 = vst [vmem:[#allocation6 + $0x540] sm:$0xff] %v711_v25  ;;  %v231_v25 = vld [vmem:[#allocation3 + $0x650] sm:$0xff]  ;;  %v744_v28 = vmul.f32 %v1670_v0, %v230_v23 }
  0xb2   :  { %1224 = vst [vmem:[#allocation6 + $0x548] sm:$0xff] %v712_v27  ;;  %v232_v27 = vld [vmem:[#allocation3 + $0x658] sm:$0xff]  ;;  %v745_v30 = vmul.f32 %v1670_v0, %v231_v25 }
  0xb3   :  { %1225 = vst [vmem:[#allocation6 + $0x550] sm:$0xff] %v713_v29  ;;  %v233_v29 = vld [vmem:[#allocation3 + $0x660] sm:$0xff]  ;;  %v746_v32 = vmul.f32 %v1670_v0, %v232_v27 }
  0xb4   :  { %1226 = vst [vmem:[#allocation6 + $0x558] sm:$0xff] %v714_v31  ;;  %v234_v31 = vld [vmem:[#allocation3 + $0x668] sm:$0xff]  ;;  %v747_v34 = vmul.f32 %v1670_v0, %v233_v29 }
  0xb5   :  { %1227 = vst [vmem:[#allocation6 + $0x560] sm:$0xff] %v715_v33  ;;  %v235_v33 = vld [vmem:[#allocation3 + $0x670] sm:$0xff]  ;;  %v748_v36 = vmul.f32 %v1670_v0, %v234_v31 }
  0xb6   :  { %1228 = vst [vmem:[#allocation6 + $0x568] sm:$0xff] %v716_v35  ;;  %v236_v35 = vld [vmem:[#allocation3 + $0x678] sm:$0xff]  ;;  %v749_v38 = vmul.f32 %v1670_v0, %v235_v33 }
  0xb7   :  { %1229 = vst [vmem:[#allocation6 + $0x570] sm:$0xff] %v717_v37  ;;  %v237_v37 = vld [vmem:[#allocation3 + $0x680] sm:$0xff]  ;;  %v750_v40 = vmul.f32 %v1670_v0, %v236_v35 }
  0xb8   :  { %1230 = vst [vmem:[#allocation6 + $0x578] sm:$0xff] %v718_v39  ;;  %v238_v39 = vld [vmem:[#allocation3 + $0x688] sm:$0xff]  ;;  %v751_v42 = vmul.f32 %v1670_v0, %v237_v37 }
  0xb9   :  { %1231 = vst [vmem:[#allocation6 + $0x580] sm:$0xff] %v719_v41  ;;  %v239_v41 = vld [vmem:[#allocation3 + $0x690] sm:$0xff]  ;;  %v752_v44 = vmul.f32 %v1670_v0, %v238_v39 }
  0xba   :  { %1232 = vst [vmem:[#allocation6 + $0x588] sm:$0xff] %v720_v43  ;;  %v240_v43 = vld [vmem:[#allocation3 + $0x698] sm:$0xff]  ;;  %v753_v46 = vmul.f32 %v1670_v0, %v239_v41 }
  0xbb   :  { %1233 = vst [vmem:[#allocation6 + $0x590] sm:$0xff] %v721_v45  ;;  %v241_v45 = vld [vmem:[#allocation3 + $0x6a0] sm:$0xff]  ;;  %v754_v48 = vmul.f32 %v1670_v0, %v240_v43 }
  0xbc   :  { %1234 = vst [vmem:[#allocation6 + $0x598] sm:$0xff] %v722_v47  ;;  %v242_v47 = vld [vmem:[#allocation3 + $0x6a8] sm:$0xff]  ;;  %v755_v50 = vmul.f32 %v1670_v0, %v241_v45 }
  0xbd   :  { %1235 = vst [vmem:[#allocation6 + $0x5a0] sm:$0xff] %v723_v49  ;;  %v243_v49 = vld [vmem:[#allocation3 + $0x6b0] sm:$0xff]  ;;  %v756_v52 = vmul.f32 %v1670_v0, %v242_v47 }
  0xbe   :  { %1236 = vst [vmem:[#allocation6 + $0x5a8] sm:$0xff] %v724_v51  ;;  %v244_v51 = vld [vmem:[#allocation3 + $0x6b8] sm:$0xff]  ;;  %v757_v54 = vmul.f32 %v1670_v0, %v243_v49 }
  0xbf   :  { %1237 = vst [vmem:[#allocation6 + $0x5b0] sm:$0xff] %v725_v53  ;;  %v245_v53 = vld [vmem:[#allocation3 + $0x6c0] sm:$0xff]  ;;  %v758_v56 = vmul.f32 %v1670_v0, %v244_v51 }
  0xc0   :  { %1238 = vst [vmem:[#allocation6 + $0x5b8] sm:$0xff] %v726_v55  ;;  %v246_v55 = vld [vmem:[#allocation3 + $0x6c8] sm:$0xff]  ;;  %v759_v58 = vmul.f32 %v1670_v0, %v245_v53 }
  0xc1   :  { %1239 = vst [vmem:[#allocation6 + $0x5c0] sm:$0xff] %v727_v57  ;;  %v247_v57 = vld [vmem:[#allocation3 + $0x6d0] sm:$0xff]  ;;  %v760_v60 = vmul.f32 %v1670_v0, %v246_v55 }
  0xc2   :  { %1240 = vst [vmem:[#allocation6 + $0x5c8] sm:$0xff] %v728_v59  ;;  %v248_v59 = vld [vmem:[#allocation3 + $0x6d8] sm:$0xff]  ;;  %v761_v62 = vmul.f32 %v1670_v0, %v247_v57 }
  0xc3   :  { %1241 = vst [vmem:[#allocation6 + $0x5d0] sm:$0xff] %v729_v61  ;;  %v249_v61 = vld [vmem:[#allocation3 + $0x6e0] sm:$0xff]  ;;  %v762_v1 = vmul.f32 %v1670_v0, %v248_v59 }
  0xc4   :  { %1242 = vst [vmem:[#allocation6 + $0x5d8] sm:$0xff] %v730_v63  ;;  %v250_v63 = vld [vmem:[#allocation3 + $0x6e8] sm:$0xff]  ;;  %v763_v3 = vmul.f32 %v1670_v0, %v249_v61 }
  0xc5   :  { %1243 = vst [vmem:[#allocation6 + $0x5e0] sm:$0xff] %v731_v2  ;;  %v251_v2 = vld [vmem:[#allocation3 + $0x6f0] sm:$0xff]  ;;  %v764_v5 = vmul.f32 %v1670_v0, %v250_v63 }
  0xc6   :  { %1244 = vst [vmem:[#allocation6 + $0x5e8] sm:$0xff] %v732_v4  ;;  %v252_v4 = vld [vmem:[#allocation3 + $0x6f8] sm:$0xff]  ;;  %v765_v7 = vmul.f32 %v1670_v0, %v251_v2 }
  0xc7   :  { %1245 = vst [vmem:[#allocation6 + $0x5f0] sm:$0xff] %v733_v6  ;;  %v253_v6 = vld [vmem:[#allocation3 + $0x700] sm:$0xff]  ;;  %v766_v9 = vmul.f32 %v1670_v0, %v252_v4 }
  0xc8   :  { %1246 = vst [vmem:[#allocation6 + $0x5f8] sm:$0xff] %v734_v8  ;;  %v254_v8 = vld [vmem:[#allocation3 + $0x708] sm:$0xff]  ;;  %v767_v11 = vmul.f32 %v1670_v0, %v253_v6 }
  0xc9   :  { %1247 = vst [vmem:[#allocation6 + $0x600] sm:$0xff] %v735_v10  ;;  %v255_v10 = vld [vmem:[#allocation3 + $0x710] sm:$0xff]  ;;  %v768_v13 = vmul.f32 %v1670_v0, %v254_v8 }
  0xca   :  { %1248 = vst [vmem:[#allocation6 + $0x608] sm:$0xff] %v736_v12  ;;  %v256_v12 = vld [vmem:[#allocation3 + $0x718] sm:$0xff]  ;;  %v769_v15 = vmul.f32 %v1670_v0, %v255_v10 }
  0xcb   :  { %1249 = vst [vmem:[#allocation6 + $0x610] sm:$0xff] %v737_v14  ;;  %v257_v14 = vld [vmem:[#allocation3 + $0x720] sm:$0xff]  ;;  %v770_v17 = vmul.f32 %v1670_v0, %v256_v12 }
  0xcc   :  { %1250 = vst [vmem:[#allocation6 + $0x618] sm:$0xff] %v738_v16  ;;  %v258_v16 = vld [vmem:[#allocation3 + $0x728] sm:$0xff]  ;;  %v771_v19 = vmul.f32 %v1670_v0, %v257_v14 }
  0xcd   :  { %1251 = vst [vmem:[#allocation6 + $0x620] sm:$0xff] %v739_v18  ;;  %v259_v18 = vld [vmem:[#allocation3 + $0x730] sm:$0xff]  ;;  %v772_v21 = vmul.f32 %v1670_v0, %v258_v16 }
  0xce   :  { %1252 = vst [vmem:[#allocation6 + $0x628] sm:$0xff] %v740_v20  ;;  %v260_v20 = vld [vmem:[#allocation3 + $0x738] sm:$0xff]  ;;  %v773_v23 = vmul.f32 %v1670_v0, %v259_v18 }
  0xcf   :  { %1253 = vst [vmem:[#allocation6 + $0x630] sm:$0xff] %v741_v22  ;;  %v261_v22 = vld [vmem:[#allocation3 + $0x740] sm:$0xff]  ;;  %v774_v25 = vmul.f32 %v1670_v0, %v260_v20 }
  0xd0   :  { %1254 = vst [vmem:[#allocation6 + $0x638] sm:$0xff] %v742_v24  ;;  %v262_v24 = vld [vmem:[#allocation3 + $0x748] sm:$0xff]  ;;  %v775_v27 = vmul.f32 %v1670_v0, %v261_v22 }
  0xd1   :  { %1255 = vst [vmem:[#allocation6 + $0x640] sm:$0xff] %v743_v26  ;;  %v263_v26 = vld [vmem:[#allocation3 + $0x750] sm:$0xff]  ;;  %v776_v29 = vmul.f32 %v1670_v0, %v262_v24 }
  0xd2   :  { %1256 = vst [vmem:[#allocation6 + $0x648] sm:$0xff] %v744_v28  ;;  %v264_v28 = vld [vmem:[#allocation3 + $0x758] sm:$0xff]  ;;  %v777_v31 = vmul.f32 %v1670_v0, %v263_v26 }
  0xd3   :  { %1257 = vst [vmem:[#allocation6 + $0x650] sm:$0xff] %v745_v30  ;;  %v265_v30 = vld [vmem:[#allocation3 + $0x760] sm:$0xff]  ;;  %v778_v33 = vmul.f32 %v1670_v0, %v264_v28 }
  0xd4   :  { %1258 = vst [vmem:[#allocation6 + $0x658] sm:$0xff] %v746_v32  ;;  %v266_v32 = vld [vmem:[#allocation3 + $0x768] sm:$0xff]  ;;  %v779_v35 = vmul.f32 %v1670_v0, %v265_v30 }
  0xd5   :  { %1259 = vst [vmem:[#allocation6 + $0x660] sm:$0xff] %v747_v34  ;;  %v267_v34 = vld [vmem:[#allocation3 + $0x770] sm:$0xff]  ;;  %v780_v37 = vmul.f32 %v1670_v0, %v266_v32 }
  0xd6   :  { %1260 = vst [vmem:[#allocation6 + $0x668] sm:$0xff] %v748_v36  ;;  %v268_v36 = vld [vmem:[#allocation3 + $0x778] sm:$0xff]  ;;  %v781_v39 = vmul.f32 %v1670_v0, %v267_v34 }
  0xd7   :  { %1261 = vst [vmem:[#allocation6 + $0x670] sm:$0xff] %v749_v38  ;;  %v269_v38 = vld [vmem:[#allocation3 + $0x780] sm:$0xff]  ;;  %v782_v41 = vmul.f32 %v1670_v0, %v268_v36 }
  0xd8   :  { %1262 = vst [vmem:[#allocation6 + $0x678] sm:$0xff] %v750_v40  ;;  %v270_v40 = vld [vmem:[#allocation3 + $0x788] sm:$0xff]  ;;  %v783_v43 = vmul.f32 %v1670_v0, %v269_v38 }
  0xd9   :  { %1263 = vst [vmem:[#allocation6 + $0x680] sm:$0xff] %v751_v42  ;;  %v271_v42 = vld [vmem:[#allocation3 + $0x790] sm:$0xff]  ;;  %v784_v45 = vmul.f32 %v1670_v0, %v270_v40 }
  0xda   :  { %1264 = vst [vmem:[#allocation6 + $0x688] sm:$0xff] %v752_v44  ;;  %v272_v44 = vld [vmem:[#allocation3 + $0x798] sm:$0xff]  ;;  %v785_v47 = vmul.f32 %v1670_v0, %v271_v42 }
  0xdb   :  { %1265 = vst [vmem:[#allocation6 + $0x690] sm:$0xff] %v753_v46  ;;  %v273_v46 = vld [vmem:[#allocation3 + $0x7a0] sm:$0xff]  ;;  %v786_v49 = vmul.f32 %v1670_v0, %v272_v44 }
  0xdc   :  { %1266 = vst [vmem:[#allocation6 + $0x698] sm:$0xff] %v754_v48  ;;  %v274_v48 = vld [vmem:[#allocation3 + $0x7a8] sm:$0xff]  ;;  %v787_v51 = vmul.f32 %v1670_v0, %v273_v46 }
  0xdd   :  { %1267 = vst [vmem:[#allocation6 + $0x6a0] sm:$0xff] %v755_v50  ;;  %v275_v50 = vld [vmem:[#allocation3 + $0x7b0] sm:$0xff]  ;;  %v788_v53 = vmul.f32 %v1670_v0, %v274_v48 }
  0xde   :  { %1268 = vst [vmem:[#allocation6 + $0x6a8] sm:$0xff] %v756_v52  ;;  %v276_v52 = vld [vmem:[#allocation3 + $0x7b8] sm:$0xff]  ;;  %v789_v55 = vmul.f32 %v1670_v0, %v275_v50 }
  0xdf   :  { %1269 = vst [vmem:[#allocation6 + $0x6b0] sm:$0xff] %v757_v54  ;;  %v277_v54 = vld [vmem:[#allocation3 + $0x7c0] sm:$0xff]  ;;  %v790_v57 = vmul.f32 %v1670_v0, %v276_v52 }
  0xe0   :  { %1270 = vst [vmem:[#allocation6 + $0x6b8] sm:$0xff] %v758_v56  ;;  %v278_v56 = vld [vmem:[#allocation3 + $0x7c8] sm:$0xff]  ;;  %v791_v59 = vmul.f32 %v1670_v0, %v277_v54 }
  0xe1   :  { %1271 = vst [vmem:[#allocation6 + $0x6c0] sm:$0xff] %v759_v58  ;;  %v279_v58 = vld [vmem:[#allocation3 + $0x7d0] sm:$0xff]  ;;  %v792_v61 = vmul.f32 %v1670_v0, %v278_v56 }
  0xe2   :  { %1272 = vst [vmem:[#allocation6 + $0x6c8] sm:$0xff] %v760_v60  ;;  %v280_v60 = vld [vmem:[#allocation3 + $0x7d8] sm:$0xff]  ;;  %v793_v63 = vmul.f32 %v1670_v0, %v279_v58 }
  0xe3   :  { %1273 = vst [vmem:[#allocation6 + $0x6d0] sm:$0xff] %v761_v62  ;;  %v281_v62 = vld [vmem:[#allocation3 + $0x7e0] sm:$0xff]  ;;  %v794_v2 = vmul.f32 %v1670_v0, %v280_v60 }
  0xe4   :  { %1274 = vst [vmem:[#allocation6 + $0x6d8] sm:$0xff] %v762_v1  ;;  %v282_v1 = vld [vmem:[#allocation3 + $0x7e8] sm:$0xff]  ;;  %v795_v4 = vmul.f32 %v1670_v0, %v281_v62 }
  0xe5   :  { %1275 = vst [vmem:[#allocation6 + $0x6e0] sm:$0xff] %v763_v3  ;;  %v283_v3 = vld [vmem:[#allocation3 + $0x7f0] sm:$0xff]  ;;  %v796_v6 = vmul.f32 %v1670_v0, %v282_v1 }
  0xe6   :  { %1276 = vst [vmem:[#allocation6 + $0x6e8] sm:$0xff] %v764_v5  ;;  %v284_v5 = vld [vmem:[#allocation3 + $0x7f8] sm:$0xff]  ;;  %v797_v8 = vmul.f32 %v1670_v0, %v283_v3 }
  0xe7   :  { %1277 = vst [vmem:[#allocation6 + $0x6f0] sm:$0xff] %v765_v7  ;;  %v285_v7 = vld [vmem:[#allocation3 + $0x800] sm:$0xff]  ;;  %v798_v10 = vmul.f32 %v1670_v0, %v284_v5 }
  0xe8   :  { %1278 = vst [vmem:[#allocation6 + $0x6f8] sm:$0xff] %v766_v9  ;;  %v286_v9 = vld [vmem:[#allocation3 + $0x808] sm:$0xff]  ;;  %v799_v12 = vmul.f32 %v1670_v0, %v285_v7 }
  0xe9   :  { %1279 = vst [vmem:[#allocation6 + $0x700] sm:$0xff] %v767_v11  ;;  %v287_v11 = vld [vmem:[#allocation3 + $0x810] sm:$0xff]  ;;  %v800_v14 = vmul.f32 %v1670_v0, %v286_v9 }
  0xea   :  { %1280 = vst [vmem:[#allocation6 + $0x708] sm:$0xff] %v768_v13  ;;  %v288_v13 = vld [vmem:[#allocation3 + $0x818] sm:$0xff]  ;;  %v801_v16 = vmul.f32 %v1670_v0, %v287_v11 }
  0xeb   :  { %1281 = vst [vmem:[#allocation6 + $0x710] sm:$0xff] %v769_v15  ;;  %v289_v15 = vld [vmem:[#allocation3 + $0x820] sm:$0xff]  ;;  %v802_v18 = vmul.f32 %v1670_v0, %v288_v13 }
  0xec   :  { %1282 = vst [vmem:[#allocation6 + $0x718] sm:$0xff] %v770_v17  ;;  %v290_v17 = vld [vmem:[#allocation3 + $0x828] sm:$0xff]  ;;  %v803_v20 = vmul.f32 %v1670_v0, %v289_v15 }
  0xed   :  { %1283 = vst [vmem:[#allocation6 + $0x720] sm:$0xff] %v771_v19  ;;  %v291_v19 = vld [vmem:[#allocation3 + $0x830] sm:$0xff]  ;;  %v804_v22 = vmul.f32 %v1670_v0, %v290_v17 }
  0xee   :  { %1284 = vst [vmem:[#allocation6 + $0x728] sm:$0xff] %v772_v21  ;;  %v292_v21 = vld [vmem:[#allocation3 + $0x838] sm:$0xff]  ;;  %v805_v24 = vmul.f32 %v1670_v0, %v291_v19 }
  0xef   :  { %1285 = vst [vmem:[#allocation6 + $0x730] sm:$0xff] %v773_v23  ;;  %v293_v23 = vld [vmem:[#allocation3 + $0x840] sm:$0xff]  ;;  %v806_v26 = vmul.f32 %v1670_v0, %v292_v21 }
  0xf0   :  { %1286 = vst [vmem:[#allocation6 + $0x738] sm:$0xff] %v774_v25  ;;  %v294_v25 = vld [vmem:[#allocation3 + $0x848] sm:$0xff]  ;;  %v807_v28 = vmul.f32 %v1670_v0, %v293_v23 }
  0xf1   :  { %1287 = vst [vmem:[#allocation6 + $0x740] sm:$0xff] %v775_v27  ;;  %v295_v27 = vld [vmem:[#allocation3 + $0x850] sm:$0xff]  ;;  %v808_v30 = vmul.f32 %v1670_v0, %v294_v25 }
  0xf2   :  { %1288 = vst [vmem:[#allocation6 + $0x748] sm:$0xff] %v776_v29  ;;  %v296_v29 = vld [vmem:[#allocation3 + $0x858] sm:$0xff]  ;;  %v809_v32 = vmul.f32 %v1670_v0, %v295_v27 }
  0xf3   :  { %1289 = vst [vmem:[#allocation6 + $0x750] sm:$0xff] %v777_v31  ;;  %v297_v31 = vld [vmem:[#allocation3 + $0x860] sm:$0xff]  ;;  %v810_v34 = vmul.f32 %v1670_v0, %v296_v29 }
  0xf4   :  { %1290 = vst [vmem:[#allocation6 + $0x758] sm:$0xff] %v778_v33  ;;  %v298_v33 = vld [vmem:[#allocation3 + $0x868] sm:$0xff]  ;;  %v811_v36 = vmul.f32 %v1670_v0, %v297_v31 }
  0xf5   :  { %1291 = vst [vmem:[#allocation6 + $0x760] sm:$0xff] %v779_v35  ;;  %v299_v35 = vld [vmem:[#allocation3 + $0x870] sm:$0xff]  ;;  %v812_v38 = vmul.f32 %v1670_v0, %v298_v33 }
  0xf6   :  { %1292 = vst [vmem:[#allocation6 + $0x768] sm:$0xff] %v780_v37  ;;  %v300_v37 = vld [vmem:[#allocation3 + $0x878] sm:$0xff]  ;;  %v813_v40 = vmul.f32 %v1670_v0, %v299_v35 }
  0xf7   :  { %1293 = vst [vmem:[#allocation6 + $0x770] sm:$0xff] %v781_v39  ;;  %v301_v39 = vld [vmem:[#allocation3 + $0x880] sm:$0xff]  ;;  %v814_v42 = vmul.f32 %v1670_v0, %v300_v37 }
  0xf8   :  { %1294 = vst [vmem:[#allocation6 + $0x778] sm:$0xff] %v782_v41  ;;  %v302_v41 = vld [vmem:[#allocation3 + $0x888] sm:$0xff]  ;;  %v815_v44 = vmul.f32 %v1670_v0, %v301_v39 }
  0xf9   :  { %1295 = vst [vmem:[#allocation6 + $0x780] sm:$0xff] %v783_v43  ;;  %v303_v43 = vld [vmem:[#allocation3 + $0x890] sm:$0xff]  ;;  %v816_v46 = vmul.f32 %v1670_v0, %v302_v41 }
  0xfa   :  { %1296 = vst [vmem:[#allocation6 + $0x788] sm:$0xff] %v784_v45  ;;  %v304_v45 = vld [vmem:[#allocation3 + $0x898] sm:$0xff]  ;;  %v817_v48 = vmul.f32 %v1670_v0, %v303_v43 }
  0xfb   :  { %1297 = vst [vmem:[#allocation6 + $0x790] sm:$0xff] %v785_v47  ;;  %v305_v47 = vld [vmem:[#allocation3 + $0x8a0] sm:$0xff]  ;;  %v818_v50 = vmul.f32 %v1670_v0, %v304_v45 }
  0xfc   :  { %1298 = vst [vmem:[#allocation6 + $0x798] sm:$0xff] %v786_v49  ;;  %v306_v49 = vld [vmem:[#allocation3 + $0x8a8] sm:$0xff]  ;;  %v819_v52 = vmul.f32 %v1670_v0, %v305_v47 }
  0xfd   :  { %1299 = vst [vmem:[#allocation6 + $0x7a0] sm:$0xff] %v787_v51  ;;  %v307_v51 = vld [vmem:[#allocation3 + $0x8b0] sm:$0xff]  ;;  %v820_v54 = vmul.f32 %v1670_v0, %v306_v49 }
  0xfe   :  { %1300 = vst [vmem:[#allocation6 + $0x7a8] sm:$0xff] %v788_v53  ;;  %v308_v53 = vld [vmem:[#allocation3 + $0x8b8] sm:$0xff]  ;;  %v821_v56 = vmul.f32 %v1670_v0, %v307_v51 }
  0xff   :  { %1301 = vst [vmem:[#allocation6 + $0x7b0] sm:$0xff] %v789_v55  ;;  %v309_v55 = vld [vmem:[#allocation3 + $0x8c0] sm:$0xff]  ;;  %v822_v58 = vmul.f32 %v1670_v0, %v308_v53 }
 0x100   :  { %1302 = vst [vmem:[#allocation6 + $0x7b8] sm:$0xff] %v790_v57  ;;  %v310_v57 = vld [vmem:[#allocation3 + $0x8c8] sm:$0xff]  ;;  %v823_v60 = vmul.f32 %v1670_v0, %v309_v55 }
 0x101   :  { %1303 = vst [vmem:[#allocation6 + $0x7c0] sm:$0xff] %v791_v59  ;;  %v311_v59 = vld [vmem:[#allocation3 + $0x8d0] sm:$0xff]  ;;  %v824_v62 = vmul.f32 %v1670_v0, %v310_v57 }
 0x102   :  { %1304 = vst [vmem:[#allocation6 + $0x7c8] sm:$0xff] %v792_v61  ;;  %v312_v61 = vld [vmem:[#allocation3 + $0x8d8] sm:$0xff]  ;;  %v825_v1 = vmul.f32 %v1670_v0, %v311_v59 }
 0x103   :  { %1305 = vst [vmem:[#allocation6 + $0x7d0] sm:$0xff] %v793_v63  ;;  %v313_v63 = vld [vmem:[#allocation3 + $0x8e0] sm:$0xff]  ;;  %v826_v3 = vmul.f32 %v1670_v0, %v312_v61 }
 0x104   :  { %1306 = vst [vmem:[#allocation6 + $0x7d8] sm:$0xff] %v794_v2  ;;  %v314_v2 = vld [vmem:[#allocation3 + $0x8e8] sm:$0xff]  ;;  %v827_v5 = vmul.f32 %v1670_v0, %v313_v63 }
 0x105   :  { %1307 = vst [vmem:[#allocation6 + $0x7e0] sm:$0xff] %v795_v4  ;;  %v315_v4 = vld [vmem:[#allocation3 + $0x8f0] sm:$0xff]  ;;  %v828_v7 = vmul.f32 %v1670_v0, %v314_v2 }
 0x106   :  { %1308 = vst [vmem:[#allocation6 + $0x7e8] sm:$0xff] %v796_v6  ;;  %v316_v6 = vld [vmem:[#allocation3 + $0x8f8] sm:$0xff]  ;;  %v829_v9 = vmul.f32 %v1670_v0, %v315_v4 }
 0x107   :  { %1309 = vst [vmem:[#allocation6 + $0x7f0] sm:$0xff] %v797_v8  ;;  %v317_v8 = vld [vmem:[#allocation3 + $0x900] sm:$0xff]  ;;  %v830_v11 = vmul.f32 %v1670_v0, %v316_v6 }
 0x108   :  { %1310 = vst [vmem:[#allocation6 + $0x7f8] sm:$0xff] %v798_v10  ;;  %v318_v10 = vld [vmem:[#allocation3 + $0x908] sm:$0xff]  ;;  %v831_v13 = vmul.f32 %v1670_v0, %v317_v8 }
 0x109   :  { %1311 = vst [vmem:[#allocation6 + $0x800] sm:$0xff] %v799_v12  ;;  %v319_v12 = vld [vmem:[#allocation3 + $0x910] sm:$0xff]  ;;  %v832_v15 = vmul.f32 %v1670_v0, %v318_v10 }
 0x10a   :  { %1312 = vst [vmem:[#allocation6 + $0x808] sm:$0xff] %v800_v14  ;;  %v320_v14 = vld [vmem:[#allocation3 + $0x918] sm:$0xff]  ;;  %v833_v17 = vmul.f32 %v1670_v0, %v319_v12 }
 0x10b   :  { %1313 = vst [vmem:[#allocation6 + $0x810] sm:$0xff] %v801_v16  ;;  %v321_v16 = vld [vmem:[#allocation3 + $0x920] sm:$0xff]  ;;  %v834_v19 = vmul.f32 %v1670_v0, %v320_v14 }
 0x10c   :  { %1314 = vst [vmem:[#allocation6 + $0x818] sm:$0xff] %v802_v18  ;;  %v322_v18 = vld [vmem:[#allocation3 + $0x928] sm:$0xff]  ;;  %v835_v21 = vmul.f32 %v1670_v0, %v321_v16 }
 0x10d   :  { %1315 = vst [vmem:[#allocation6 + $0x820] sm:$0xff] %v803_v20  ;;  %v323_v20 = vld [vmem:[#allocation3 + $0x930] sm:$0xff]  ;;  %v836_v23 = vmul.f32 %v1670_v0, %v322_v18 }
 0x10e   :  { %1316 = vst [vmem:[#allocation6 + $0x828] sm:$0xff] %v804_v22  ;;  %v324_v22 = vld [vmem:[#allocation3 + $0x938] sm:$0xff]  ;;  %v837_v25 = vmul.f32 %v1670_v0, %v323_v20 }
 0x10f   :  { %1317 = vst [vmem:[#allocation6 + $0x830] sm:$0xff] %v805_v24  ;;  %v325_v24 = vld [vmem:[#allocation3 + $0x940] sm:$0xff]  ;;  %v838_v27 = vmul.f32 %v1670_v0, %v324_v22 }
 0x110   :  { %1318 = vst [vmem:[#allocation6 + $0x838] sm:$0xff] %v806_v26  ;;  %v326_v26 = vld [vmem:[#allocation3 + $0x948] sm:$0xff]  ;;  %v839_v29 = vmul.f32 %v1670_v0, %v325_v24 }
 0x111   :  { %1319 = vst [vmem:[#allocation6 + $0x840] sm:$0xff] %v807_v28  ;;  %v327_v28 = vld [vmem:[#allocation3 + $0x950] sm:$0xff]  ;;  %v840_v31 = vmul.f32 %v1670_v0, %v326_v26 }
 0x112   :  { %1320 = vst [vmem:[#allocation6 + $0x848] sm:$0xff] %v808_v30  ;;  %v328_v30 = vld [vmem:[#allocation3 + $0x958] sm:$0xff]  ;;  %v841_v33 = vmul.f32 %v1670_v0, %v327_v28 }
 0x113   :  { %1321 = vst [vmem:[#allocation6 + $0x850] sm:$0xff] %v809_v32  ;;  %v329_v32 = vld [vmem:[#allocation3 + $0x960] sm:$0xff]  ;;  %v842_v35 = vmul.f32 %v1670_v0, %v328_v30 }
 0x114   :  { %1322 = vst [vmem:[#allocation6 + $0x858] sm:$0xff] %v810_v34  ;;  %v330_v34 = vld [vmem:[#allocation3 + $0x968] sm:$0xff]  ;;  %v843_v37 = vmul.f32 %v1670_v0, %v329_v32 }
 0x115   :  { %1323 = vst [vmem:[#allocation6 + $0x860] sm:$0xff] %v811_v36  ;;  %v331_v36 = vld [vmem:[#allocation3 + $0x970] sm:$0xff]  ;;  %v844_v39 = vmul.f32 %v1670_v0, %v330_v34 }
 0x116   :  { %1324 = vst [vmem:[#allocation6 + $0x868] sm:$0xff] %v812_v38  ;;  %v332_v38 = vld [vmem:[#allocation3 + $0x978] sm:$0xff]  ;;  %v845_v41 = vmul.f32 %v1670_v0, %v331_v36 }
 0x117   :  { %1325 = vst [vmem:[#allocation6 + $0x870] sm:$0xff] %v813_v40  ;;  %v333_v40 = vld [vmem:[#allocation3 + $0x980] sm:$0xff]  ;;  %v846_v43 = vmul.f32 %v1670_v0, %v332_v38 }
 0x118   :  { %1326 = vst [vmem:[#allocation6 + $0x878] sm:$0xff] %v814_v42  ;;  %v334_v42 = vld [vmem:[#allocation3 + $0x988] sm:$0xff]  ;;  %v847_v45 = vmul.f32 %v1670_v0, %v333_v40 }
 0x119   :  { %1327 = vst [vmem:[#allocation6 + $0x880] sm:$0xff] %v815_v44  ;;  %v335_v44 = vld [vmem:[#allocation3 + $0x990] sm:$0xff]  ;;  %v848_v47 = vmul.f32 %v1670_v0, %v334_v42 }
 0x11a   :  { %1328 = vst [vmem:[#allocation6 + $0x888] sm:$0xff] %v816_v46  ;;  %v336_v46 = vld [vmem:[#allocation3 + $0x998] sm:$0xff]  ;;  %v849_v49 = vmul.f32 %v1670_v0, %v335_v44 }
 0x11b   :  { %1329 = vst [vmem:[#allocation6 + $0x890] sm:$0xff] %v817_v48  ;;  %v337_v48 = vld [vmem:[#allocation3 + $0x9a0] sm:$0xff]  ;;  %v850_v51 = vmul.f32 %v1670_v0, %v336_v46 }
 0x11c   :  { %1330 = vst [vmem:[#allocation6 + $0x898] sm:$0xff] %v818_v50  ;;  %v338_v50 = vld [vmem:[#allocation3 + $0x9a8] sm:$0xff]  ;;  %v851_v53 = vmul.f32 %v1670_v0, %v337_v48 }
 0x11d   :  { %1331 = vst [vmem:[#allocation6 + $0x8a0] sm:$0xff] %v819_v52  ;;  %v339_v52 = vld [vmem:[#allocation3 + $0x9b0] sm:$0xff]  ;;  %v852_v55 = vmul.f32 %v1670_v0, %v338_v50 }
 0x11e   :  { %1332 = vst [vmem:[#allocation6 + $0x8a8] sm:$0xff] %v820_v54  ;;  %v340_v54 = vld [vmem:[#allocation3 + $0x9b8] sm:$0xff]  ;;  %v853_v57 = vmul.f32 %v1670_v0, %v339_v52 }
 0x11f   :  { %1333 = vst [vmem:[#allocation6 + $0x8b0] sm:$0xff] %v821_v56  ;;  %v341_v56 = vld [vmem:[#allocation3 + $0x9c0] sm:$0xff]  ;;  %v854_v59 = vmul.f32 %v1670_v0, %v340_v54 }
 0x120   :  { %1334 = vst [vmem:[#allocation6 + $0x8b8] sm:$0xff] %v822_v58  ;;  %v342_v58 = vld [vmem:[#allocation3 + $0x9c8] sm:$0xff]  ;;  %v855_v61 = vmul.f32 %v1670_v0, %v341_v56 }
 0x121   :  { %1335 = vst [vmem:[#allocation6 + $0x8c0] sm:$0xff] %v823_v60  ;;  %v343_v60 = vld [vmem:[#allocation3 + $0x9d0] sm:$0xff]  ;;  %v856_v63 = vmul.f32 %v1670_v0, %v342_v58 }
 0x122   :  { %1336 = vst [vmem:[#allocation6 + $0x8c8] sm:$0xff] %v824_v62  ;;  %v344_v62 = vld [vmem:[#allocation3 + $0x9d8] sm:$0xff]  ;;  %v857_v2 = vmul.f32 %v1670_v0, %v343_v60 }
 0x123   :  { %1337 = vst [vmem:[#allocation6 + $0x8d0] sm:$0xff] %v825_v1  ;;  %v345_v1 = vld [vmem:[#allocation3 + $0x9e0] sm:$0xff]  ;;  %v858_v4 = vmul.f32 %v1670_v0, %v344_v62 }
 0x124   :  { %1338 = vst [vmem:[#allocation6 + $0x8d8] sm:$0xff] %v826_v3  ;;  %v346_v3 = vld [vmem:[#allocation3 + $0x9e8] sm:$0xff]  ;;  %v859_v6 = vmul.f32 %v1670_v0, %v345_v1 }
 0x125   :  { %1339 = vst [vmem:[#allocation6 + $0x8e0] sm:$0xff] %v827_v5  ;;  %v347_v5 = vld [vmem:[#allocation3 + $0x9f0] sm:$0xff]  ;;  %v860_v8 = vmul.f32 %v1670_v0, %v346_v3 }
 0x126   :  { %1340 = vst [vmem:[#allocation6 + $0x8e8] sm:$0xff] %v828_v7  ;;  %v348_v7 = vld [vmem:[#allocation3 + $0x9f8] sm:$0xff]  ;;  %v861_v10 = vmul.f32 %v1670_v0, %v347_v5 }
 0x127   :  { %1341 = vst [vmem:[#allocation6 + $0x8f0] sm:$0xff] %v829_v9  ;;  %v349_v9 = vld [vmem:[#allocation3 + $0xa00] sm:$0xff]  ;;  %v862_v12 = vmul.f32 %v1670_v0, %v348_v7 }
 0x128   :  { %1342 = vst [vmem:[#allocation6 + $0x8f8] sm:$0xff] %v830_v11  ;;  %v350_v11 = vld [vmem:[#allocation3 + $0xa08] sm:$0xff]  ;;  %v863_v14 = vmul.f32 %v1670_v0, %v349_v9 }
 0x129   :  { %1343 = vst [vmem:[#allocation6 + $0x900] sm:$0xff] %v831_v13  ;;  %v351_v13 = vld [vmem:[#allocation3 + $0xa10] sm:$0xff]  ;;  %v864_v16 = vmul.f32 %v1670_v0, %v350_v11 }
 0x12a   :  { %1344 = vst [vmem:[#allocation6 + $0x908] sm:$0xff] %v832_v15  ;;  %v352_v15 = vld [vmem:[#allocation3 + $0xa18] sm:$0xff]  ;;  %v865_v18 = vmul.f32 %v1670_v0, %v351_v13 }
 0x12b   :  { %1345 = vst [vmem:[#allocation6 + $0x910] sm:$0xff] %v833_v17  ;;  %v353_v17 = vld [vmem:[#allocation3 + $0xa20] sm:$0xff]  ;;  %v866_v20 = vmul.f32 %v1670_v0, %v352_v15 }
 0x12c   :  { %1346 = vst [vmem:[#allocation6 + $0x918] sm:$0xff] %v834_v19  ;;  %v354_v19 = vld [vmem:[#allocation3 + $0xa28] sm:$0xff]  ;;  %v867_v22 = vmul.f32 %v1670_v0, %v353_v17 }
 0x12d   :  { %1347 = vst [vmem:[#allocation6 + $0x920] sm:$0xff] %v835_v21  ;;  %v355_v21 = vld [vmem:[#allocation3 + $0xa30] sm:$0xff]  ;;  %v868_v24 = vmul.f32 %v1670_v0, %v354_v19 }
 0x12e   :  { %1348 = vst [vmem:[#allocation6 + $0x928] sm:$0xff] %v836_v23  ;;  %v356_v23 = vld [vmem:[#allocation3 + $0xa38] sm:$0xff]  ;;  %v869_v26 = vmul.f32 %v1670_v0, %v355_v21 }
 0x12f   :  { %1349 = vst [vmem:[#allocation6 + $0x930] sm:$0xff] %v837_v25  ;;  %v357_v25 = vld [vmem:[#allocation3 + $0xa40] sm:$0xff]  ;;  %v870_v28 = vmul.f32 %v1670_v0, %v356_v23 }
 0x130   :  { %1350 = vst [vmem:[#allocation6 + $0x938] sm:$0xff] %v838_v27  ;;  %v358_v27 = vld [vmem:[#allocation3 + $0xa48] sm:$0xff]  ;;  %v871_v30 = vmul.f32 %v1670_v0, %v357_v25 }
 0x131   :  { %1351 = vst [vmem:[#allocation6 + $0x940] sm:$0xff] %v839_v29  ;;  %v359_v29 = vld [vmem:[#allocation3 + $0xa50] sm:$0xff]  ;;  %v872_v32 = vmul.f32 %v1670_v0, %v358_v27 }
 0x132   :  { %1352 = vst [vmem:[#allocation6 + $0x948] sm:$0xff] %v840_v31  ;;  %v360_v31 = vld [vmem:[#allocation3 + $0xa58] sm:$0xff]  ;;  %v873_v34 = vmul.f32 %v1670_v0, %v359_v29 }
 0x133   :  { %1353 = vst [vmem:[#allocation6 + $0x950] sm:$0xff] %v841_v33  ;;  %v361_v33 = vld [vmem:[#allocation3 + $0xa60] sm:$0xff]  ;;  %v874_v36 = vmul.f32 %v1670_v0, %v360_v31 }
 0x134   :  { %1354 = vst [vmem:[#allocation6 + $0x958] sm:$0xff] %v842_v35  ;;  %v362_v35 = vld [vmem:[#allocation3 + $0xa68] sm:$0xff]  ;;  %v875_v38 = vmul.f32 %v1670_v0, %v361_v33 }
 0x135   :  { %1355 = vst [vmem:[#allocation6 + $0x960] sm:$0xff] %v843_v37  ;;  %v363_v37 = vld [vmem:[#allocation3 + $0xa70] sm:$0xff]  ;;  %v876_v40 = vmul.f32 %v1670_v0, %v362_v35 }
 0x136   :  { %1356 = vst [vmem:[#allocation6 + $0x968] sm:$0xff] %v844_v39  ;;  %v364_v39 = vld [vmem:[#allocation3 + $0xa78] sm:$0xff]  ;;  %v877_v42 = vmul.f32 %v1670_v0, %v363_v37 }
 0x137   :  { %1357 = vst [vmem:[#allocation6 + $0x970] sm:$0xff] %v845_v41  ;;  %v365_v41 = vld [vmem:[#allocation3 + $0xa80] sm:$0xff]  ;;  %v878_v44 = vmul.f32 %v1670_v0, %v364_v39 }
 0x138   :  { %1358 = vst [vmem:[#allocation6 + $0x978] sm:$0xff] %v846_v43  ;;  %v366_v43 = vld [vmem:[#allocation3 + $0xa88] sm:$0xff]  ;;  %v879_v46 = vmul.f32 %v1670_v0, %v365_v41 }
 0x139   :  { %1359 = vst [vmem:[#allocation6 + $0x980] sm:$0xff] %v847_v45  ;;  %v367_v45 = vld [vmem:[#allocation3 + $0xa90] sm:$0xff]  ;;  %v880_v48 = vmul.f32 %v1670_v0, %v366_v43 }
 0x13a   :  { %1360 = vst [vmem:[#allocation6 + $0x988] sm:$0xff] %v848_v47  ;;  %v368_v47 = vld [vmem:[#allocation3 + $0xa98] sm:$0xff]  ;;  %v881_v50 = vmul.f32 %v1670_v0, %v367_v45 }
 0x13b   :  { %1361 = vst [vmem:[#allocation6 + $0x990] sm:$0xff] %v849_v49  ;;  %v369_v49 = vld [vmem:[#allocation3 + $0xaa0] sm:$0xff]  ;;  %v882_v52 = vmul.f32 %v1670_v0, %v368_v47 }
 0x13c   :  { %1362 = vst [vmem:[#allocation6 + $0x998] sm:$0xff] %v850_v51  ;;  %v370_v51 = vld [vmem:[#allocation3 + $0xaa8] sm:$0xff]  ;;  %v883_v54 = vmul.f32 %v1670_v0, %v369_v49 }
 0x13d   :  { %1363 = vst [vmem:[#allocation6 + $0x9a0] sm:$0xff] %v851_v53  ;;  %v371_v53 = vld [vmem:[#allocation3 + $0xab0] sm:$0xff]  ;;  %v884_v56 = vmul.f32 %v1670_v0, %v370_v51 }
 0x13e   :  { %1364 = vst [vmem:[#allocation6 + $0x9a8] sm:$0xff] %v852_v55  ;;  %v372_v55 = vld [vmem:[#allocation3 + $0xab8] sm:$0xff]  ;;  %v885_v58 = vmul.f32 %v1670_v0, %v371_v53 }
 0x13f   :  { %1365 = vst [vmem:[#allocation6 + $0x9b0] sm:$0xff] %v853_v57  ;;  %v373_v57 = vld [vmem:[#allocation3 + $0xac0] sm:$0xff]  ;;  %v886_v60 = vmul.f32 %v1670_v0, %v372_v55 }
 0x140   :  { %1366 = vst [vmem:[#allocation6 + $0x9b8] sm:$0xff] %v854_v59  ;;  %v374_v59 = vld [vmem:[#allocation3 + $0xac8] sm:$0xff]  ;;  %v887_v62 = vmul.f32 %v1670_v0, %v373_v57 }
 0x141   :  { %1367 = vst [vmem:[#allocation6 + $0x9c0] sm:$0xff] %v855_v61  ;;  %v375_v61 = vld [vmem:[#allocation3 + $0xad0] sm:$0xff]  ;;  %v888_v1 = vmul.f32 %v1670_v0, %v374_v59 }
 0x142   :  { %1368 = vst [vmem:[#allocation6 + $0x9c8] sm:$0xff] %v856_v63  ;;  %v376_v63 = vld [vmem:[#allocation3 + $0xad8] sm:$0xff]  ;;  %v889_v3 = vmul.f32 %v1670_v0, %v375_v61 }
 0x143   :  { %1369 = vst [vmem:[#allocation6 + $0x9d0] sm:$0xff] %v857_v2  ;;  %v377_v2 = vld [vmem:[#allocation3 + $0xae0] sm:$0xff]  ;;  %v890_v5 = vmul.f32 %v1670_v0, %v376_v63 }
 0x144   :  { %1370 = vst [vmem:[#allocation6 + $0x9d8] sm:$0xff] %v858_v4  ;;  %v378_v4 = vld [vmem:[#allocation3 + $0xae8] sm:$0xff]  ;;  %v891_v7 = vmul.f32 %v1670_v0, %v377_v2 }
 0x145   :  { %1371 = vst [vmem:[#allocation6 + $0x9e0] sm:$0xff] %v859_v6  ;;  %v379_v6 = vld [vmem:[#allocation3 + $0xaf0] sm:$0xff]  ;;  %v892_v9 = vmul.f32 %v1670_v0, %v378_v4 }
 0x146   :  { %1372 = vst [vmem:[#allocation6 + $0x9e8] sm:$0xff] %v860_v8  ;;  %v380_v8 = vld [vmem:[#allocation3 + $0xaf8] sm:$0xff]  ;;  %v893_v11 = vmul.f32 %v1670_v0, %v379_v6 }
 0x147   :  { %1373 = vst [vmem:[#allocation6 + $0x9f0] sm:$0xff] %v861_v10  ;;  %v381_v10 = vld [vmem:[#allocation3 + $0xb00] sm:$0xff]  ;;  %v894_v13 = vmul.f32 %v1670_v0, %v380_v8 }
 0x148   :  { %1374 = vst [vmem:[#allocation6 + $0x9f8] sm:$0xff] %v862_v12  ;;  %v382_v12 = vld [vmem:[#allocation3 + $0xb08] sm:$0xff]  ;;  %v895_v15 = vmul.f32 %v1670_v0, %v381_v10 }
 0x149   :  { %1375 = vst [vmem:[#allocation6 + $0xa00] sm:$0xff] %v863_v14  ;;  %v383_v14 = vld [vmem:[#allocation3 + $0xb10] sm:$0xff]  ;;  %v896_v17 = vmul.f32 %v1670_v0, %v382_v12 }
 0x14a   :  { %1376 = vst [vmem:[#allocation6 + $0xa08] sm:$0xff] %v864_v16  ;;  %v384_v16 = vld [vmem:[#allocation3 + $0xb18] sm:$0xff]  ;;  %v897_v19 = vmul.f32 %v1670_v0, %v383_v14 }
 0x14b   :  { %1377 = vst [vmem:[#allocation6 + $0xa10] sm:$0xff] %v865_v18  ;;  %v385_v18 = vld [vmem:[#allocation3 + $0xb20] sm:$0xff]  ;;  %v898_v21 = vmul.f32 %v1670_v0, %v384_v16 }
 0x14c   :  { %1378 = vst [vmem:[#allocation6 + $0xa18] sm:$0xff] %v866_v20  ;;  %v386_v20 = vld [vmem:[#allocation3 + $0xb28] sm:$0xff]  ;;  %v899_v23 = vmul.f32 %v1670_v0, %v385_v18 }
 0x14d   :  { %1379 = vst [vmem:[#allocation6 + $0xa20] sm:$0xff] %v867_v22  ;;  %v387_v22 = vld [vmem:[#allocation3 + $0xb30] sm:$0xff]  ;;  %v900_v25 = vmul.f32 %v1670_v0, %v386_v20 }
 0x14e   :  { %1380 = vst [vmem:[#allocation6 + $0xa28] sm:$0xff] %v868_v24  ;;  %v388_v24 = vld [vmem:[#allocation3 + $0xb38] sm:$0xff]  ;;  %v901_v27 = vmul.f32 %v1670_v0, %v387_v22 }
 0x14f   :  { %1381 = vst [vmem:[#allocation6 + $0xa30] sm:$0xff] %v869_v26  ;;  %v389_v26 = vld [vmem:[#allocation3 + $0xb40] sm:$0xff]  ;;  %v902_v29 = vmul.f32 %v1670_v0, %v388_v24 }
 0x150   :  { %1382 = vst [vmem:[#allocation6 + $0xa38] sm:$0xff] %v870_v28  ;;  %v390_v28 = vld [vmem:[#allocation3 + $0xb48] sm:$0xff]  ;;  %v903_v31 = vmul.f32 %v1670_v0, %v389_v26 }
 0x151   :  { %1383 = vst [vmem:[#allocation6 + $0xa40] sm:$0xff] %v871_v30  ;;  %v391_v30 = vld [vmem:[#allocation3 + $0xb50] sm:$0xff]  ;;  %v904_v33 = vmul.f32 %v1670_v0, %v390_v28 }
 0x152   :  { %1384 = vst [vmem:[#allocation6 + $0xa48] sm:$0xff] %v872_v32  ;;  %v392_v32 = vld [vmem:[#allocation3 + $0xb58] sm:$0xff]  ;;  %v905_v35 = vmul.f32 %v1670_v0, %v391_v30 }
 0x153   :  { %1385 = vst [vmem:[#allocation6 + $0xa50] sm:$0xff] %v873_v34  ;;  %v393_v34 = vld [vmem:[#allocation3 + $0xb60] sm:$0xff]  ;;  %v906_v37 = vmul.f32 %v1670_v0, %v392_v32 }
 0x154   :  { %1386 = vst [vmem:[#allocation6 + $0xa58] sm:$0xff] %v874_v36  ;;  %v394_v36 = vld [vmem:[#allocation3 + $0xb68] sm:$0xff]  ;;  %v907_v39 = vmul.f32 %v1670_v0, %v393_v34 }
 0x155   :  { %1387 = vst [vmem:[#allocation6 + $0xa60] sm:$0xff] %v875_v38  ;;  %v395_v38 = vld [vmem:[#allocation3 + $0xb70] sm:$0xff]  ;;  %v908_v41 = vmul.f32 %v1670_v0, %v394_v36 }
 0x156   :  { %1388 = vst [vmem:[#allocation6 + $0xa68] sm:$0xff] %v876_v40  ;;  %v396_v40 = vld [vmem:[#allocation3 + $0xb78] sm:$0xff]  ;;  %v909_v43 = vmul.f32 %v1670_v0, %v395_v38 }
 0x157   :  { %1389 = vst [vmem:[#allocation6 + $0xa70] sm:$0xff] %v877_v42  ;;  %v397_v42 = vld [vmem:[#allocation3 + $0xb80] sm:$0xff]  ;;  %v910_v45 = vmul.f32 %v1670_v0, %v396_v40 }
 0x158   :  { %1390 = vst [vmem:[#allocation6 + $0xa78] sm:$0xff] %v878_v44  ;;  %v398_v44 = vld [vmem:[#allocation3 + $0xb88] sm:$0xff]  ;;  %v911_v47 = vmul.f32 %v1670_v0, %v397_v42 }
 0x159   :  { %1391 = vst [vmem:[#allocation6 + $0xa80] sm:$0xff] %v879_v46  ;;  %v399_v46 = vld [vmem:[#allocation3 + $0xb90] sm:$0xff]  ;;  %v912_v49 = vmul.f32 %v1670_v0, %v398_v44 }
 0x15a   :  { %1392 = vst [vmem:[#allocation6 + $0xa88] sm:$0xff] %v880_v48  ;;  %v400_v48 = vld [vmem:[#allocation3 + $0xb98] sm:$0xff]  ;;  %v913_v51 = vmul.f32 %v1670_v0, %v399_v46 }
 0x15b   :  { %1393 = vst [vmem:[#allocation6 + $0xa90] sm:$0xff] %v881_v50  ;;  %v401_v50 = vld [vmem:[#allocation3 + $0xba0] sm:$0xff]  ;;  %v914_v53 = vmul.f32 %v1670_v0, %v400_v48 }
 0x15c   :  { %1394 = vst [vmem:[#allocation6 + $0xa98] sm:$0xff] %v882_v52  ;;  %v402_v52 = vld [vmem:[#allocation3 + $0xba8] sm:$0xff]  ;;  %v915_v55 = vmul.f32 %v1670_v0, %v401_v50 }
 0x15d   :  { %1395 = vst [vmem:[#allocation6 + $0xaa0] sm:$0xff] %v883_v54  ;;  %v403_v54 = vld [vmem:[#allocation3 + $0xbb0] sm:$0xff]  ;;  %v916_v57 = vmul.f32 %v1670_v0, %v402_v52 }
 0x15e   :  { %1396 = vst [vmem:[#allocation6 + $0xaa8] sm:$0xff] %v884_v56  ;;  %v404_v56 = vld [vmem:[#allocation3 + $0xbb8] sm:$0xff]  ;;  %v917_v59 = vmul.f32 %v1670_v0, %v403_v54 }
 0x15f   :  { %1397 = vst [vmem:[#allocation6 + $0xab0] sm:$0xff] %v885_v58  ;;  %v405_v58 = vld [vmem:[#allocation3 + $0xbc0] sm:$0xff]  ;;  %v918_v61 = vmul.f32 %v1670_v0, %v404_v56 }
 0x160   :  { %1398 = vst [vmem:[#allocation6 + $0xab8] sm:$0xff] %v886_v60  ;;  %v406_v60 = vld [vmem:[#allocation3 + $0xbc8] sm:$0xff]  ;;  %v919_v63 = vmul.f32 %v1670_v0, %v405_v58 }
 0x161   :  { %1399 = vst [vmem:[#allocation6 + $0xac0] sm:$0xff] %v887_v62  ;;  %v407_v62 = vld [vmem:[#allocation3 + $0xbd0] sm:$0xff]  ;;  %v920_v2 = vmul.f32 %v1670_v0, %v406_v60 }
 0x162   :  { %1400 = vst [vmem:[#allocation6 + $0xac8] sm:$0xff] %v888_v1  ;;  %v408_v1 = vld [vmem:[#allocation3 + $0xbd8] sm:$0xff]  ;;  %v921_v4 = vmul.f32 %v1670_v0, %v407_v62 }
 0x163   :  { %1401 = vst [vmem:[#allocation6 + $0xad0] sm:$0xff] %v889_v3  ;;  %v409_v3 = vld [vmem:[#allocation3 + $0xbe0] sm:$0xff]  ;;  %v922_v6 = vmul.f32 %v1670_v0, %v408_v1 }
 0x164   :  { %1402 = vst [vmem:[#allocation6 + $0xad8] sm:$0xff] %v890_v5  ;;  %v410_v5 = vld [vmem:[#allocation3 + $0xbe8] sm:$0xff]  ;;  %v923_v8 = vmul.f32 %v1670_v0, %v409_v3 }
 0x165   :  { %1403 = vst [vmem:[#allocation6 + $0xae0] sm:$0xff] %v891_v7  ;;  %v411_v7 = vld [vmem:[#allocation3 + $0xbf0] sm:$0xff]  ;;  %v924_v10 = vmul.f32 %v1670_v0, %v410_v5 }
 0x166   :  { %1404 = vst [vmem:[#allocation6 + $0xae8] sm:$0xff] %v892_v9  ;;  %v412_v9 = vld [vmem:[#allocation3 + $0xbf8] sm:$0xff]  ;;  %v925_v12 = vmul.f32 %v1670_v0, %v411_v7 }
 0x167   :  { %1405 = vst [vmem:[#allocation6 + $0xaf0] sm:$0xff] %v893_v11  ;;  %v413_v11 = vld [vmem:[#allocation3 + $0xc00] sm:$0xff]  ;;  %v926_v14 = vmul.f32 %v1670_v0, %v412_v9 }
 0x168   :  { %1406 = vst [vmem:[#allocation6 + $0xaf8] sm:$0xff] %v894_v13  ;;  %v414_v13 = vld [vmem:[#allocation3 + $0xc08] sm:$0xff]  ;;  %v927_v16 = vmul.f32 %v1670_v0, %v413_v11 }
 0x169   :  { %1407 = vst [vmem:[#allocation6 + $0xb00] sm:$0xff] %v895_v15  ;;  %v415_v15 = vld [vmem:[#allocation3 + $0xc10] sm:$0xff]  ;;  %v928_v18 = vmul.f32 %v1670_v0, %v414_v13 }
 0x16a   :  { %1408 = vst [vmem:[#allocation6 + $0xb08] sm:$0xff] %v896_v17  ;;  %v416_v17 = vld [vmem:[#allocation3 + $0xc18] sm:$0xff]  ;;  %v929_v20 = vmul.f32 %v1670_v0, %v415_v15 }
 0x16b   :  { %1409 = vst [vmem:[#allocation6 + $0xb10] sm:$0xff] %v897_v19  ;;  %v417_v19 = vld [vmem:[#allocation3 + $0xc20] sm:$0xff]  ;;  %v930_v22 = vmul.f32 %v1670_v0, %v416_v17 }
 0x16c   :  { %1410 = vst [vmem:[#allocation6 + $0xb18] sm:$0xff] %v898_v21  ;;  %v418_v21 = vld [vmem:[#allocation3 + $0xc28] sm:$0xff]  ;;  %v931_v24 = vmul.f32 %v1670_v0, %v417_v19 }
 0x16d   :  { %1411 = vst [vmem:[#allocation6 + $0xb20] sm:$0xff] %v899_v23  ;;  %v419_v23 = vld [vmem:[#allocation3 + $0xc30] sm:$0xff]  ;;  %v932_v26 = vmul.f32 %v1670_v0, %v418_v21 }
 0x16e   :  { %1412 = vst [vmem:[#allocation6 + $0xb28] sm:$0xff] %v900_v25  ;;  %v420_v25 = vld [vmem:[#allocation3 + $0xc38] sm:$0xff]  ;;  %v933_v28 = vmul.f32 %v1670_v0, %v419_v23 }
 0x16f   :  { %1413 = vst [vmem:[#allocation6 + $0xb30] sm:$0xff] %v901_v27  ;;  %v421_v27 = vld [vmem:[#allocation3 + $0xc40] sm:$0xff]  ;;  %v934_v30 = vmul.f32 %v1670_v0, %v420_v25 }
 0x170   :  { %1414 = vst [vmem:[#allocation6 + $0xb38] sm:$0xff] %v902_v29  ;;  %v422_v29 = vld [vmem:[#allocation3 + $0xc48] sm:$0xff]  ;;  %v935_v32 = vmul.f32 %v1670_v0, %v421_v27 }
 0x171   :  { %1415 = vst [vmem:[#allocation6 + $0xb40] sm:$0xff] %v903_v31  ;;  %v423_v31 = vld [vmem:[#allocation3 + $0xc50] sm:$0xff]  ;;  %v936_v34 = vmul.f32 %v1670_v0, %v422_v29 }
 0x172   :  { %1416 = vst [vmem:[#allocation6 + $0xb48] sm:$0xff] %v904_v33  ;;  %v424_v33 = vld [vmem:[#allocation3 + $0xc58] sm:$0xff]  ;;  %v937_v36 = vmul.f32 %v1670_v0, %v423_v31 }
 0x173   :  { %1417 = vst [vmem:[#allocation6 + $0xb50] sm:$0xff] %v905_v35  ;;  %v425_v35 = vld [vmem:[#allocation3 + $0xc60] sm:$0xff]  ;;  %v938_v38 = vmul.f32 %v1670_v0, %v424_v33 }
 0x174   :  { %1418 = vst [vmem:[#allocation6 + $0xb58] sm:$0xff] %v906_v37  ;;  %v426_v37 = vld [vmem:[#allocation3 + $0xc68] sm:$0xff]  ;;  %v939_v40 = vmul.f32 %v1670_v0, %v425_v35 }
 0x175   :  { %1419 = vst [vmem:[#allocation6 + $0xb60] sm:$0xff] %v907_v39  ;;  %v427_v39 = vld [vmem:[#allocation3 + $0xc70] sm:$0xff]  ;;  %v940_v42 = vmul.f32 %v1670_v0, %v426_v37 }
 0x176   :  { %1420 = vst [vmem:[#allocation6 + $0xb68] sm:$0xff] %v908_v41  ;;  %v428_v41 = vld [vmem:[#allocation3 + $0xc78] sm:$0xff]  ;;  %v941_v44 = vmul.f32 %v1670_v0, %v427_v39 }
 0x177   :  { %1421 = vst [vmem:[#allocation6 + $0xb70] sm:$0xff] %v909_v43  ;;  %v429_v43 = vld [vmem:[#allocation3 + $0xc80] sm:$0xff]  ;;  %v942_v46 = vmul.f32 %v1670_v0, %v428_v41 }
 0x178   :  { %1422 = vst [vmem:[#allocation6 + $0xb78] sm:$0xff] %v910_v45  ;;  %v430_v45 = vld [vmem:[#allocation3 + $0xc88] sm:$0xff]  ;;  %v943_v48 = vmul.f32 %v1670_v0, %v429_v43 }
 0x179   :  { %1423 = vst [vmem:[#allocation6 + $0xb80] sm:$0xff] %v911_v47  ;;  %v431_v47 = vld [vmem:[#allocation3 + $0xc90] sm:$0xff]  ;;  %v944_v50 = vmul.f32 %v1670_v0, %v430_v45 }
 0x17a   :  { %1424 = vst [vmem:[#allocation6 + $0xb88] sm:$0xff] %v912_v49  ;;  %v432_v49 = vld [vmem:[#allocation3 + $0xc98] sm:$0xff]  ;;  %v945_v52 = vmul.f32 %v1670_v0, %v431_v47 }
 0x17b   :  { %1425 = vst [vmem:[#allocation6 + $0xb90] sm:$0xff] %v913_v51  ;;  %v433_v51 = vld [vmem:[#allocation3 + $0xca0] sm:$0xff]  ;;  %v946_v54 = vmul.f32 %v1670_v0, %v432_v49 }
 0x17c   :  { %1426 = vst [vmem:[#allocation6 + $0xb98] sm:$0xff] %v914_v53  ;;  %v434_v53 = vld [vmem:[#allocation3 + $0xca8] sm:$0xff]  ;;  %v947_v56 = vmul.f32 %v1670_v0, %v433_v51 }
 0x17d   :  { %1427 = vst [vmem:[#allocation6 + $0xba0] sm:$0xff] %v915_v55  ;;  %v435_v55 = vld [vmem:[#allocation3 + $0xcb0] sm:$0xff]  ;;  %v948_v58 = vmul.f32 %v1670_v0, %v434_v53 }
 0x17e   :  { %1428 = vst [vmem:[#allocation6 + $0xba8] sm:$0xff] %v916_v57  ;;  %v436_v57 = vld [vmem:[#allocation3 + $0xcb8] sm:$0xff]  ;;  %v949_v60 = vmul.f32 %v1670_v0, %v435_v55 }
 0x17f   :  { %1429 = vst [vmem:[#allocation6 + $0xbb0] sm:$0xff] %v917_v59  ;;  %v437_v59 = vld [vmem:[#allocation3 + $0xcc0] sm:$0xff]  ;;  %v950_v62 = vmul.f32 %v1670_v0, %v436_v57 }
 0x180   :  { %1430 = vst [vmem:[#allocation6 + $0xbb8] sm:$0xff] %v918_v61  ;;  %v438_v61 = vld [vmem:[#allocation3 + $0xcc8] sm:$0xff]  ;;  %v951_v1 = vmul.f32 %v1670_v0, %v437_v59 }
 0x181   :  { %1431 = vst [vmem:[#allocation6 + $0xbc0] sm:$0xff] %v919_v63  ;;  %v439_v63 = vld [vmem:[#allocation3 + $0xcd0] sm:$0xff]  ;;  %v952_v3 = vmul.f32 %v1670_v0, %v438_v61 }
 0x182   :  { %1432 = vst [vmem:[#allocation6 + $0xbc8] sm:$0xff] %v920_v2  ;;  %v440_v2 = vld [vmem:[#allocation3 + $0xcd8] sm:$0xff]  ;;  %v953_v5 = vmul.f32 %v1670_v0, %v439_v63 }
 0x183   :  { %1433 = vst [vmem:[#allocation6 + $0xbd0] sm:$0xff] %v921_v4  ;;  %v441_v4 = vld [vmem:[#allocation3 + $0xce0] sm:$0xff]  ;;  %v954_v7 = vmul.f32 %v1670_v0, %v440_v2 }
 0x184   :  { %1434 = vst [vmem:[#allocation6 + $0xbd8] sm:$0xff] %v922_v6  ;;  %v442_v6 = vld [vmem:[#allocation3 + $0xce8] sm:$0xff]  ;;  %v955_v9 = vmul.f32 %v1670_v0, %v441_v4 }
 0x185   :  { %1435 = vst [vmem:[#allocation6 + $0xbe0] sm:$0xff] %v923_v8  ;;  %v443_v8 = vld [vmem:[#allocation3 + $0xcf0] sm:$0xff]  ;;  %v956_v11 = vmul.f32 %v1670_v0, %v442_v6 }
 0x186   :  { %1436 = vst [vmem:[#allocation6 + $0xbe8] sm:$0xff] %v924_v10  ;;  %v444_v10 = vld [vmem:[#allocation3 + $0xcf8] sm:$0xff]  ;;  %v957_v13 = vmul.f32 %v1670_v0, %v443_v8 }
 0x187   :  { %1437 = vst [vmem:[#allocation6 + $0xbf0] sm:$0xff] %v925_v12  ;;  %v445_v12 = vld [vmem:[#allocation3 + $0xd00] sm:$0xff]  ;;  %v958_v15 = vmul.f32 %v1670_v0, %v444_v10 }
 0x188   :  { %1438 = vst [vmem:[#allocation6 + $0xbf8] sm:$0xff] %v926_v14  ;;  %v446_v14 = vld [vmem:[#allocation3 + $0xd08] sm:$0xff]  ;;  %v959_v17 = vmul.f32 %v1670_v0, %v445_v12 }
 0x189   :  { %1439 = vst [vmem:[#allocation6 + $0xc00] sm:$0xff] %v927_v16  ;;  %v447_v16 = vld [vmem:[#allocation3 + $0xd10] sm:$0xff]  ;;  %v960_v19 = vmul.f32 %v1670_v0, %v446_v14 }
 0x18a   :  { %1440 = vst [vmem:[#allocation6 + $0xc08] sm:$0xff] %v928_v18  ;;  %v448_v18 = vld [vmem:[#allocation3 + $0xd18] sm:$0xff]  ;;  %v961_v21 = vmul.f32 %v1670_v0, %v447_v16 }
 0x18b   :  { %1441 = vst [vmem:[#allocation6 + $0xc10] sm:$0xff] %v929_v20  ;;  %v449_v20 = vld [vmem:[#allocation3 + $0xd20] sm:$0xff]  ;;  %v962_v23 = vmul.f32 %v1670_v0, %v448_v18 }
 0x18c   :  { %1442 = vst [vmem:[#allocation6 + $0xc18] sm:$0xff] %v930_v22  ;;  %v450_v22 = vld [vmem:[#allocation3 + $0xd28] sm:$0xff]  ;;  %v963_v25 = vmul.f32 %v1670_v0, %v449_v20 }
 0x18d   :  { %1443 = vst [vmem:[#allocation6 + $0xc20] sm:$0xff] %v931_v24  ;;  %v451_v24 = vld [vmem:[#allocation3 + $0xd30] sm:$0xff]  ;;  %v964_v27 = vmul.f32 %v1670_v0, %v450_v22 }
 0x18e   :  { %1444 = vst [vmem:[#allocation6 + $0xc28] sm:$0xff] %v932_v26  ;;  %v452_v26 = vld [vmem:[#allocation3 + $0xd38] sm:$0xff]  ;;  %v965_v29 = vmul.f32 %v1670_v0, %v451_v24 }
 0x18f   :  { %1445 = vst [vmem:[#allocation6 + $0xc30] sm:$0xff] %v933_v28  ;;  %v453_v28 = vld [vmem:[#allocation3 + $0xd40] sm:$0xff]  ;;  %v966_v31 = vmul.f32 %v1670_v0, %v452_v26 }
 0x190   :  { %1446 = vst [vmem:[#allocation6 + $0xc38] sm:$0xff] %v934_v30  ;;  %v454_v30 = vld [vmem:[#allocation3 + $0xd48] sm:$0xff]  ;;  %v967_v33 = vmul.f32 %v1670_v0, %v453_v28 }
 0x191   :  { %1447 = vst [vmem:[#allocation6 + $0xc40] sm:$0xff] %v935_v32  ;;  %v455_v32 = vld [vmem:[#allocation3 + $0xd50] sm:$0xff]  ;;  %v968_v35 = vmul.f32 %v1670_v0, %v454_v30 }
 0x192   :  { %1448 = vst [vmem:[#allocation6 + $0xc48] sm:$0xff] %v936_v34  ;;  %v456_v34 = vld [vmem:[#allocation3 + $0xd58] sm:$0xff]  ;;  %v969_v37 = vmul.f32 %v1670_v0, %v455_v32 }
 0x193   :  { %1449 = vst [vmem:[#allocation6 + $0xc50] sm:$0xff] %v937_v36  ;;  %v457_v36 = vld [vmem:[#allocation3 + $0xd60] sm:$0xff]  ;;  %v970_v39 = vmul.f32 %v1670_v0, %v456_v34 }
 0x194   :  { %1450 = vst [vmem:[#allocation6 + $0xc58] sm:$0xff] %v938_v38  ;;  %v458_v38 = vld [vmem:[#allocation3 + $0xd68] sm:$0xff]  ;;  %v971_v41 = vmul.f32 %v1670_v0, %v457_v36 }
 0x195   :  { %1451 = vst [vmem:[#allocation6 + $0xc60] sm:$0xff] %v939_v40  ;;  %v459_v40 = vld [vmem:[#allocation3 + $0xd70] sm:$0xff]  ;;  %v972_v43 = vmul.f32 %v1670_v0, %v458_v38 }
 0x196   :  { %1452 = vst [vmem:[#allocation6 + $0xc68] sm:$0xff] %v940_v42  ;;  %v460_v42 = vld [vmem:[#allocation3 + $0xd78] sm:$0xff]  ;;  %v973_v45 = vmul.f32 %v1670_v0, %v459_v40 }
 0x197   :  { %1453 = vst [vmem:[#allocation6 + $0xc70] sm:$0xff] %v941_v44  ;;  %v461_v44 = vld [vmem:[#allocation3 + $0xd80] sm:$0xff]  ;;  %v974_v47 = vmul.f32 %v1670_v0, %v460_v42 }
 0x198   :  { %1454 = vst [vmem:[#allocation6 + $0xc78] sm:$0xff] %v942_v46  ;;  %v462_v46 = vld [vmem:[#allocation3 + $0xd88] sm:$0xff]  ;;  %v975_v49 = vmul.f32 %v1670_v0, %v461_v44 }
 0x199   :  { %1455 = vst [vmem:[#allocation6 + $0xc80] sm:$0xff] %v943_v48  ;;  %v463_v48 = vld [vmem:[#allocation3 + $0xd90] sm:$0xff]  ;;  %v976_v51 = vmul.f32 %v1670_v0, %v462_v46 }
 0x19a   :  { %1456 = vst [vmem:[#allocation6 + $0xc88] sm:$0xff] %v944_v50  ;;  %v464_v50 = vld [vmem:[#allocation3 + $0xd98] sm:$0xff]  ;;  %v977_v53 = vmul.f32 %v1670_v0, %v463_v48 }
 0x19b   :  { %1457 = vst [vmem:[#allocation6 + $0xc90] sm:$0xff] %v945_v52  ;;  %v465_v52 = vld [vmem:[#allocation3 + $0xda0] sm:$0xff]  ;;  %v978_v55 = vmul.f32 %v1670_v0, %v464_v50 }
 0x19c   :  { %1458 = vst [vmem:[#allocation6 + $0xc98] sm:$0xff] %v946_v54  ;;  %v466_v54 = vld [vmem:[#allocation3 + $0xda8] sm:$0xff]  ;;  %v979_v57 = vmul.f32 %v1670_v0, %v465_v52 }
 0x19d   :  { %1459 = vst [vmem:[#allocation6 + $0xca0] sm:$0xff] %v947_v56  ;;  %v467_v56 = vld [vmem:[#allocation3 + $0xdb0] sm:$0xff]  ;;  %v980_v59 = vmul.f32 %v1670_v0, %v466_v54 }
 0x19e   :  { %1460 = vst [vmem:[#allocation6 + $0xca8] sm:$0xff] %v948_v58  ;;  %v468_v58 = vld [vmem:[#allocation3 + $0xdb8] sm:$0xff]  ;;  %v981_v61 = vmul.f32 %v1670_v0, %v467_v56 }
 0x19f   :  { %1461 = vst [vmem:[#allocation6 + $0xcb0] sm:$0xff] %v949_v60  ;;  %v469_v60 = vld [vmem:[#allocation3 + $0xdc0] sm:$0xff]  ;;  %v982_v63 = vmul.f32 %v1670_v0, %v468_v58 }
 0x1a0   :  { %1462 = vst [vmem:[#allocation6 + $0xcb8] sm:$0xff] %v950_v62  ;;  %v470_v62 = vld [vmem:[#allocation3 + $0xdc8] sm:$0xff]  ;;  %v983_v2 = vmul.f32 %v1670_v0, %v469_v60 }
 0x1a1   :  { %1463 = vst [vmem:[#allocation6 + $0xcc0] sm:$0xff] %v951_v1  ;;  %v471_v1 = vld [vmem:[#allocation3 + $0xdd0] sm:$0xff]  ;;  %v984_v4 = vmul.f32 %v1670_v0, %v470_v62 }
 0x1a2   :  { %1464 = vst [vmem:[#allocation6 + $0xcc8] sm:$0xff] %v952_v3  ;;  %v472_v3 = vld [vmem:[#allocation3 + $0xdd8] sm:$0xff]  ;;  %v985_v6 = vmul.f32 %v1670_v0, %v471_v1 }
 0x1a3   :  { %1465 = vst [vmem:[#allocation6 + $0xcd0] sm:$0xff] %v953_v5  ;;  %v473_v5 = vld [vmem:[#allocation3 + $0xde0] sm:$0xff]  ;;  %v986_v8 = vmul.f32 %v1670_v0, %v472_v3 }
 0x1a4   :  { %1466 = vst [vmem:[#allocation6 + $0xcd8] sm:$0xff] %v954_v7  ;;  %v474_v7 = vld [vmem:[#allocation3 + $0xde8] sm:$0xff]  ;;  %v987_v10 = vmul.f32 %v1670_v0, %v473_v5 }
 0x1a5   :  { %1467 = vst [vmem:[#allocation6 + $0xce0] sm:$0xff] %v955_v9  ;;  %v475_v9 = vld [vmem:[#allocation3 + $0xdf0] sm:$0xff]  ;;  %v988_v12 = vmul.f32 %v1670_v0, %v474_v7 }
 0x1a6   :  { %1468 = vst [vmem:[#allocation6 + $0xce8] sm:$0xff] %v956_v11  ;;  %v476_v11 = vld [vmem:[#allocation3 + $0xdf8] sm:$0xff]  ;;  %v989_v14 = vmul.f32 %v1670_v0, %v475_v9 }
 0x1a7   :  { %1469 = vst [vmem:[#allocation6 + $0xcf0] sm:$0xff] %v957_v13  ;;  %v477_v13 = vld [vmem:[#allocation3 + $0xe00] sm:$0xff]  ;;  %v990_v16 = vmul.f32 %v1670_v0, %v476_v11 }
 0x1a8   :  { %1470 = vst [vmem:[#allocation6 + $0xcf8] sm:$0xff] %v958_v15  ;;  %v478_v15 = vld [vmem:[#allocation3 + $0xe08] sm:$0xff]  ;;  %v991_v18 = vmul.f32 %v1670_v0, %v477_v13 }
 0x1a9   :  { %1471 = vst [vmem:[#allocation6 + $0xd00] sm:$0xff] %v959_v17  ;;  %v479_v17 = vld [vmem:[#allocation3 + $0xe10] sm:$0xff]  ;;  %v992_v20 = vmul.f32 %v1670_v0, %v478_v15 }
 0x1aa   :  { %1472 = vst [vmem:[#allocation6 + $0xd08] sm:$0xff] %v960_v19  ;;  %v480_v19 = vld [vmem:[#allocation3 + $0xe18] sm:$0xff]  ;;  %v993_v22 = vmul.f32 %v1670_v0, %v479_v17 }
 0x1ab   :  { %1473 = vst [vmem:[#allocation6 + $0xd10] sm:$0xff] %v961_v21  ;;  %v481_v21 = vld [vmem:[#allocation3 + $0xe20] sm:$0xff]  ;;  %v994_v24 = vmul.f32 %v1670_v0, %v480_v19 }
 0x1ac   :  { %1474 = vst [vmem:[#allocation6 + $0xd18] sm:$0xff] %v962_v23  ;;  %v482_v23 = vld [vmem:[#allocation3 + $0xe28] sm:$0xff]  ;;  %v995_v26 = vmul.f32 %v1670_v0, %v481_v21 }
 0x1ad   :  { %1475 = vst [vmem:[#allocation6 + $0xd20] sm:$0xff] %v963_v25  ;;  %v483_v25 = vld [vmem:[#allocation3 + $0xe30] sm:$0xff]  ;;  %v996_v28 = vmul.f32 %v1670_v0, %v482_v23 }
 0x1ae   :  { %1476 = vst [vmem:[#allocation6 + $0xd28] sm:$0xff] %v964_v27  ;;  %v484_v27 = vld [vmem:[#allocation3 + $0xe38] sm:$0xff]  ;;  %v997_v30 = vmul.f32 %v1670_v0, %v483_v25 }
 0x1af   :  { %1477 = vst [vmem:[#allocation6 + $0xd30] sm:$0xff] %v965_v29  ;;  %v485_v29 = vld [vmem:[#allocation3 + $0xe40] sm:$0xff]  ;;  %v998_v32 = vmul.f32 %v1670_v0, %v484_v27 }
 0x1b0   :  { %1478 = vst [vmem:[#allocation6 + $0xd38] sm:$0xff] %v966_v31  ;;  %v486_v31 = vld [vmem:[#allocation3 + $0xe48] sm:$0xff]  ;;  %v999_v34 = vmul.f32 %v1670_v0, %v485_v29 }
 0x1b1   :  { %1479 = vst [vmem:[#allocation6 + $0xd40] sm:$0xff] %v967_v33  ;;  %v487_v33 = vld [vmem:[#allocation3 + $0xe50] sm:$0xff]  ;;  %v1000_v36 = vmul.f32 %v1670_v0, %v486_v31 }
 0x1b2   :  { %1480 = vst [vmem:[#allocation6 + $0xd48] sm:$0xff] %v968_v35  ;;  %v488_v35 = vld [vmem:[#allocation3 + $0xe58] sm:$0xff]  ;;  %v1001_v38 = vmul.f32 %v1670_v0, %v487_v33 }
 0x1b3   :  { %1481 = vst [vmem:[#allocation6 + $0xd50] sm:$0xff] %v969_v37  ;;  %v489_v37 = vld [vmem:[#allocation3 + $0xe60] sm:$0xff]  ;;  %v1002_v40 = vmul.f32 %v1670_v0, %v488_v35 }
 0x1b4   :  { %1482 = vst [vmem:[#allocation6 + $0xd58] sm:$0xff] %v970_v39  ;;  %v490_v39 = vld [vmem:[#allocation3 + $0xe68] sm:$0xff]  ;;  %v1003_v42 = vmul.f32 %v1670_v0, %v489_v37 }
 0x1b5   :  { %1483 = vst [vmem:[#allocation6 + $0xd60] sm:$0xff] %v971_v41  ;;  %v491_v41 = vld [vmem:[#allocation3 + $0xe70] sm:$0xff]  ;;  %v1004_v44 = vmul.f32 %v1670_v0, %v490_v39 }
 0x1b6   :  { %1484 = vst [vmem:[#allocation6 + $0xd68] sm:$0xff] %v972_v43  ;;  %v492_v43 = vld [vmem:[#allocation3 + $0xe78] sm:$0xff]  ;;  %v1005_v46 = vmul.f32 %v1670_v0, %v491_v41 }
 0x1b7   :  { %1485 = vst [vmem:[#allocation6 + $0xd70] sm:$0xff] %v973_v45  ;;  %v493_v45 = vld [vmem:[#allocation3 + $0xe80] sm:$0xff]  ;;  %v1006_v48 = vmul.f32 %v1670_v0, %v492_v43 }
 0x1b8   :  { %1486 = vst [vmem:[#allocation6 + $0xd78] sm:$0xff] %v974_v47  ;;  %v494_v47 = vld [vmem:[#allocation3 + $0xe88] sm:$0xff]  ;;  %v1007_v50 = vmul.f32 %v1670_v0, %v493_v45 }
 0x1b9   :  { %1487 = vst [vmem:[#allocation6 + $0xd80] sm:$0xff] %v975_v49  ;;  %v495_v49 = vld [vmem:[#allocation3 + $0xe90] sm:$0xff]  ;;  %v1008_v52 = vmul.f32 %v1670_v0, %v494_v47 }
 0x1ba   :  { %1488 = vst [vmem:[#allocation6 + $0xd88] sm:$0xff] %v976_v51  ;;  %v496_v51 = vld [vmem:[#allocation3 + $0xe98] sm:$0xff]  ;;  %v1009_v54 = vmul.f32 %v1670_v0, %v495_v49 }
 0x1bb   :  { %1489 = vst [vmem:[#allocation6 + $0xd90] sm:$0xff] %v977_v53  ;;  %v497_v53 = vld [vmem:[#allocation3 + $0xea0] sm:$0xff]  ;;  %v1010_v56 = vmul.f32 %v1670_v0, %v496_v51 }
 0x1bc   :  { %1490 = vst [vmem:[#allocation6 + $0xd98] sm:$0xff] %v978_v55  ;;  %v498_v55 = vld [vmem:[#allocation3 + $0xea8] sm:$0xff]  ;;  %v1011_v58 = vmul.f32 %v1670_v0, %v497_v53 }
 0x1bd   :  { %1491 = vst [vmem:[#allocation6 + $0xda0] sm:$0xff] %v979_v57  ;;  %v499_v57 = vld [vmem:[#allocation3 + $0xeb0] sm:$0xff]  ;;  %v1012_v60 = vmul.f32 %v1670_v0, %v498_v55 }
 0x1be   :  { %1492 = vst [vmem:[#allocation6 + $0xda8] sm:$0xff] %v980_v59  ;;  %v500_v59 = vld [vmem:[#allocation3 + $0xeb8] sm:$0xff]  ;;  %v1013_v62 = vmul.f32 %v1670_v0, %v499_v57 }
 0x1bf   :  { %1493 = vst [vmem:[#allocation6 + $0xdb0] sm:$0xff] %v981_v61  ;;  %v501_v61 = vld [vmem:[#allocation3 + $0xec0] sm:$0xff]  ;;  %v1014_v1 = vmul.f32 %v1670_v0, %v500_v59 }
 0x1c0   :  { %1494 = vst [vmem:[#allocation6 + $0xdb8] sm:$0xff] %v982_v63  ;;  %v502_v63 = vld [vmem:[#allocation3 + $0xec8] sm:$0xff]  ;;  %v1015_v3 = vmul.f32 %v1670_v0, %v501_v61 }
 0x1c1   :  { %1495 = vst [vmem:[#allocation6 + $0xdc0] sm:$0xff] %v983_v2  ;;  %v503_v2 = vld [vmem:[#allocation3 + $0xed0] sm:$0xff]  ;;  %v1016_v5 = vmul.f32 %v1670_v0, %v502_v63 }
 0x1c2   :  { %1496 = vst [vmem:[#allocation6 + $0xdc8] sm:$0xff] %v984_v4  ;;  %v504_v4 = vld [vmem:[#allocation3 + $0xed8] sm:$0xff]  ;;  %v1017_v7 = vmul.f32 %v1670_v0, %v503_v2 }
 0x1c3   :  { %1497 = vst [vmem:[#allocation6 + $0xdd0] sm:$0xff] %v985_v6  ;;  %v505_v6 = vld [vmem:[#allocation3 + $0xee0] sm:$0xff]  ;;  %v1018_v9 = vmul.f32 %v1670_v0, %v504_v4 }
 0x1c4   :  { %1498 = vst [vmem:[#allocation6 + $0xdd8] sm:$0xff] %v986_v8  ;;  %v506_v8 = vld [vmem:[#allocation3 + $0xee8] sm:$0xff]  ;;  %v1019_v11 = vmul.f32 %v1670_v0, %v505_v6 }
 0x1c5   :  { %1499 = vst [vmem:[#allocation6 + $0xde0] sm:$0xff] %v987_v10  ;;  %v507_v10 = vld [vmem:[#allocation3 + $0xef0] sm:$0xff]  ;;  %v1020_v13 = vmul.f32 %v1670_v0, %v506_v8 }
 0x1c6   :  { %1500 = vst [vmem:[#allocation6 + $0xde8] sm:$0xff] %v988_v12  ;;  %v508_v12 = vld [vmem:[#allocation3 + $0xef8] sm:$0xff]  ;;  %v1021_v15 = vmul.f32 %v1670_v0, %v507_v10 }
 0x1c7   :  { %1501 = vst [vmem:[#allocation6 + $0xdf0] sm:$0xff] %v989_v14  ;;  %v509_v14 = vld [vmem:[#allocation3 + $0xf00] sm:$0xff]  ;;  %v1022_v17 = vmul.f32 %v1670_v0, %v508_v12 }
 0x1c8   :  { %1502 = vst [vmem:[#allocation6 + $0xdf8] sm:$0xff] %v990_v16  ;;  %v510_v16 = vld [vmem:[#allocation3 + $0xf08] sm:$0xff]  ;;  %v1023_v19 = vmul.f32 %v1670_v0, %v509_v14 }
 0x1c9   :  { %1503 = vst [vmem:[#allocation6 + $0xe00] sm:$0xff] %v991_v18  ;;  %v511_v18 = vld [vmem:[#allocation3 + $0xf10] sm:$0xff]  ;;  %v1024_v21 = vmul.f32 %v1670_v0, %v510_v16 }
 0x1ca   :  { %1504 = vst [vmem:[#allocation6 + $0xe08] sm:$0xff] %v992_v20  ;;  %v512_v20 = vld [vmem:[#allocation3 + $0xf18] sm:$0xff]  ;;  %v1025_v23 = vmul.f32 %v1670_v0, %v511_v18 }
 0x1cb   :  { %1505 = vst [vmem:[#allocation6 + $0xe10] sm:$0xff] %v993_v22  ;;  %v513_v22 = vld [vmem:[#allocation3 + $0xf20] sm:$0xff]  ;;  %v1026_v25 = vmul.f32 %v1670_v0, %v512_v20 }
 0x1cc   :  { %1506 = vst [vmem:[#allocation6 + $0xe18] sm:$0xff] %v994_v24  ;;  %v514_v24 = vld [vmem:[#allocation3 + $0xf28] sm:$0xff]  ;;  %v1027_v27 = vmul.f32 %v1670_v0, %v513_v22 }
 0x1cd   :  { %1507 = vst [vmem:[#allocation6 + $0xe20] sm:$0xff] %v995_v26  ;;  %v515_v26 = vld [vmem:[#allocation3 + $0xf30] sm:$0xff]  ;;  %v1028_v29 = vmul.f32 %v1670_v0, %v514_v24 }
 0x1ce   :  { %1508 = vst [vmem:[#allocation6 + $0xe28] sm:$0xff] %v996_v28  ;;  %v516_v28 = vld [vmem:[#allocation3 + $0xf38] sm:$0xff]  ;;  %v1029_v31 = vmul.f32 %v1670_v0, %v515_v26 }
 0x1cf   :  { %1509 = vst [vmem:[#allocation6 + $0xe30] sm:$0xff] %v997_v30  ;;  %v517_v30 = vld [vmem:[#allocation3 + $0xf40] sm:$0xff]  ;;  %v1030_v33 = vmul.f32 %v1670_v0, %v516_v28 }
 0x1d0   :  { %1510 = vst [vmem:[#allocation6 + $0xe38] sm:$0xff] %v998_v32  ;;  %v518_v32 = vld [vmem:[#allocation3 + $0xf48] sm:$0xff]  ;;  %v1031_v35 = vmul.f32 %v1670_v0, %v517_v30 }
 0x1d1   :  { %1511 = vst [vmem:[#allocation6 + $0xe40] sm:$0xff] %v999_v34  ;;  %v519_v34 = vld [vmem:[#allocation3 + $0xf50] sm:$0xff]  ;;  %v1032_v37 = vmul.f32 %v1670_v0, %v518_v32 }
 0x1d2   :  { %1512 = vst [vmem:[#allocation6 + $0xe48] sm:$0xff] %v1000_v36  ;;  %v520_v36 = vld [vmem:[#allocation3 + $0xf58] sm:$0xff]  ;;  %v1033_v39 = vmul.f32 %v1670_v0, %v519_v34 }
 0x1d3   :  { %1513 = vst [vmem:[#allocation6 + $0xe50] sm:$0xff] %v1001_v38  ;;  %v521_v38 = vld [vmem:[#allocation3 + $0xf60] sm:$0xff]  ;;  %v1034_v41 = vmul.f32 %v1670_v0, %v520_v36 }
 0x1d4   :  { %1514 = vst [vmem:[#allocation6 + $0xe58] sm:$0xff] %v1002_v40  ;;  %v522_v40 = vld [vmem:[#allocation3 + $0xf68] sm:$0xff]  ;;  %v1035_v43 = vmul.f32 %v1670_v0, %v521_v38 }
 0x1d5   :  { %1515 = vst [vmem:[#allocation6 + $0xe60] sm:$0xff] %v1003_v42  ;;  %v523_v42 = vld [vmem:[#allocation3 + $0xf70] sm:$0xff]  ;;  %v1036_v45 = vmul.f32 %v1670_v0, %v522_v40 }
 0x1d6   :  { %1516 = vst [vmem:[#allocation6 + $0xe68] sm:$0xff] %v1004_v44  ;;  %v524_v44 = vld [vmem:[#allocation3 + $0xf78] sm:$0xff]  ;;  %v1037_v47 = vmul.f32 %v1670_v0, %v523_v42 }
 0x1d7   :  { %1517 = vst [vmem:[#allocation6 + $0xe70] sm:$0xff] %v1005_v46  ;;  %v525_v46 = vld [vmem:[#allocation3 + $0xf80] sm:$0xff]  ;;  %v1038_v49 = vmul.f32 %v1670_v0, %v524_v44 }
 0x1d8   :  { %1518 = vst [vmem:[#allocation6 + $0xe78] sm:$0xff] %v1006_v48  ;;  %v526_v48 = vld [vmem:[#allocation3 + $0xf88] sm:$0xff]  ;;  %v1039_v51 = vmul.f32 %v1670_v0, %v525_v46 }
 0x1d9   :  { %1519 = vst [vmem:[#allocation6 + $0xe80] sm:$0xff] %v1007_v50  ;;  %v527_v50 = vld [vmem:[#allocation3 + $0xf90] sm:$0xff]  ;;  %v1040_v53 = vmul.f32 %v1670_v0, %v526_v48 }
 0x1da   :  { %1520 = vst [vmem:[#allocation6 + $0xe88] sm:$0xff] %v1008_v52  ;;  %v528_v52 = vld [vmem:[#allocation3 + $0xf98] sm:$0xff]  ;;  %v1041_v55 = vmul.f32 %v1670_v0, %v527_v50 }
 0x1db   :  { %1521 = vst [vmem:[#allocation6 + $0xe90] sm:$0xff] %v1009_v54  ;;  %v529_v54 = vld [vmem:[#allocation3 + $0xfa0] sm:$0xff]  ;;  %v1042_v57 = vmul.f32 %v1670_v0, %v528_v52 }
 0x1dc   :  { %1522 = vst [vmem:[#allocation6 + $0xe98] sm:$0xff] %v1010_v56  ;;  %v530_v56 = vld [vmem:[#allocation3 + $0xfa8] sm:$0xff]  ;;  %v1043_v59 = vmul.f32 %v1670_v0, %v529_v54 }
 0x1dd   :  { %1523 = vst [vmem:[#allocation6 + $0xea0] sm:$0xff] %v1011_v58  ;;  %v531_v58 = vld [vmem:[#allocation3 + $0xfb0] sm:$0xff]  ;;  %v1044_v61 = vmul.f32 %v1670_v0, %v530_v56 }
 0x1de   :  { %1524 = vst [vmem:[#allocation6 + $0xea8] sm:$0xff] %v1012_v60  ;;  %v532_v60 = vld [vmem:[#allocation3 + $0xfb8] sm:$0xff]  ;;  %v1045_v63 = vmul.f32 %v1670_v0, %v531_v58 }
 0x1df   :  { %1525 = vst [vmem:[#allocation6 + $0xeb0] sm:$0xff] %v1013_v62  ;;  %v533_v62 = vld [vmem:[#allocation3 + $0xfc0] sm:$0xff]  ;;  %v1046_v2 = vmul.f32 %v1670_v0, %v532_v60 }
 0x1e0   :  { %1526 = vst [vmem:[#allocation6 + $0xeb8] sm:$0xff] %v1014_v1  ;;  %v534_v1 = vld [vmem:[#allocation3 + $0xfc8] sm:$0xff]  ;;  %v1047_v4 = vmul.f32 %v1670_v0, %v533_v62 }
 0x1e1   :  { %1527 = vst [vmem:[#allocation6 + $0xec0] sm:$0xff] %v1015_v3  ;;  %v535_v3 = vld [vmem:[#allocation3 + $0xfd0] sm:$0xff]  ;;  %v1048_v6 = vmul.f32 %v1670_v0, %v534_v1 }
 0x1e2   :  { %1528 = vst [vmem:[#allocation6 + $0xec8] sm:$0xff] %v1016_v5  ;;  %v536_v5 = vld [vmem:[#allocation3 + $0xfd8] sm:$0xff]  ;;  %v1049_v8 = vmul.f32 %v1670_v0, %v535_v3 }
 0x1e3   :  { %1529 = vst [vmem:[#allocation6 + $0xed0] sm:$0xff] %v1017_v7  ;;  %v537_v7 = vld [vmem:[#allocation3 + $0xfe0] sm:$0xff]  ;;  %v1050_v10 = vmul.f32 %v1670_v0, %v536_v5 }
 0x1e4   :  { %1530 = vst [vmem:[#allocation6 + $0xed8] sm:$0xff] %v1018_v9  ;;  %v538_v9 = vld [vmem:[#allocation3 + $0xfe8] sm:$0xff]  ;;  %v1051_v12 = vmul.f32 %v1670_v0, %v537_v7 }
 0x1e5   :  { %1531 = vst [vmem:[#allocation6 + $0xee0] sm:$0xff] %v1019_v11  ;;  %v539_v11 = vld [vmem:[#allocation3 + $0xff0] sm:$0xff]  ;;  %v1052_v14 = vmul.f32 %v1670_v0, %v538_v9 }
 0x1e6   :  { %1532 = vst [vmem:[#allocation6 + $0xee8] sm:$0xff] %v1020_v13  ;;  %v540_v13 = vld [vmem:[#allocation3 + $0xff8] sm:$0xff] }
 0x1e7   :  { %1533 = vst [vmem:[#allocation6 + $0xef0] sm:$0xff] %v1021_v15  ;;  %v1053_v15 = vmul.f32 %v1670_v0, %v539_v11  ;;  %v1054_v16 = vmul.f32 %v1670_v0, %v540_v13 }
 0x1e8   :  { %1534 = vst [vmem:[#allocation6 + $0xef8] sm:$0xff] %v1022_v17 }
 0x1e9   :  { %1535 = vst [vmem:[#allocation6 + $0xf00] sm:$0xff] %v1023_v19 }
 0x1ea   :  { %1536 = vst [vmem:[#allocation6 + $0xf08] sm:$0xff] %v1024_v21 }
 0x1eb   :  { %1537 = vst [vmem:[#allocation6 + $0xf10] sm:$0xff] %v1025_v23 }
 0x1ec   :  { %1538 = vst [vmem:[#allocation6 + $0xf18] sm:$0xff] %v1026_v25 }
 0x1ed   :  { %1539 = vst [vmem:[#allocation6 + $0xf20] sm:$0xff] %v1027_v27 }
 0x1ee   :  { %1540 = vst [vmem:[#allocation6 + $0xf28] sm:$0xff] %v1028_v29 }
 0x1ef   :  { %1541 = vst [vmem:[#allocation6 + $0xf30] sm:$0xff] %v1029_v31 }
 0x1f0   :  { %1542 = vst [vmem:[#allocation6 + $0xf38] sm:$0xff] %v1030_v33 }
 0x1f1   :  { %1543 = vst [vmem:[#allocation6 + $0xf40] sm:$0xff] %v1031_v35 }
 0x1f2   :  { %1544 = vst [vmem:[#allocation6 + $0xf48] sm:$0xff] %v1032_v37 }
 0x1f3   :  { %1545 = vst [vmem:[#allocation6 + $0xf50] sm:$0xff] %v1033_v39 }
 0x1f4   :  { %1546 = vst [vmem:[#allocation6 + $0xf58] sm:$0xff] %v1034_v41 }
 0x1f5   :  { %1547 = vst [vmem:[#allocation6 + $0xf60] sm:$0xff] %v1035_v43 }
 0x1f6   :  { %1548 = vst [vmem:[#allocation6 + $0xf68] sm:$0xff] %v1036_v45 }
 0x1f7   :  { %1549 = vst [vmem:[#allocation6 + $0xf70] sm:$0xff] %v1037_v47 }
 0x1f8   :  { %1550 = vst [vmem:[#allocation6 + $0xf78] sm:$0xff] %v1038_v49 }
 0x1f9   :  { %1551 = vst [vmem:[#allocation6 + $0xf80] sm:$0xff] %v1039_v51 }
 0x1fa   :  { %1552 = vst [vmem:[#allocation6 + $0xf88] sm:$0xff] %v1040_v53 }
 0x1fb   :  { %1553 = vst [vmem:[#allocation6 + $0xf90] sm:$0xff] %v1041_v55 }
 0x1fc   :  { %1554 = vst [vmem:[#allocation6 + $0xf98] sm:$0xff] %v1042_v57 }
 0x1fd   :  { %1555 = vst [vmem:[#allocation6 + $0xfa0] sm:$0xff] %v1043_v59 }
 0x1fe   :  { %1556 = vst [vmem:[#allocation6 + $0xfa8] sm:$0xff] %v1044_v61 }
 0x1ff   :  { %1557 = vst [vmem:[#allocation6 + $0xfb0] sm:$0xff] %v1045_v63 }
 0x200   :  { %1558 = vst [vmem:[#allocation6 + $0xfb8] sm:$0xff] %v1046_v2 }
 0x201   :  { %1559 = vst [vmem:[#allocation6 + $0xfc0] sm:$0xff] %v1047_v4 }
 0x202   :  { %1560 = vst [vmem:[#allocation6 + $0xfc8] sm:$0xff] %v1048_v6 }
 0x203   :  { %1561 = vst [vmem:[#allocation6 + $0xfd0] sm:$0xff] %v1049_v8 }
 0x204   :  { %1562 = vst [vmem:[#allocation6 + $0xfd8] sm:$0xff] %v1050_v10 }
 0x205   :  { %1563 = vst [vmem:[#allocation6 + $0xfe0] sm:$0xff] %v1051_v12 }
 0x206   :  { %1564 = vst [vmem:[#allocation6 + $0xfe8] sm:$0xff] %v1052_v14 }
 0x207   :  { %1565 = vst [vmem:[#allocation6 + $0xff0] sm:$0xff] %v1053_v15 }
 0x208   :  { %1566 = vst [vmem:[#allocation6 + $0xff8] sm:$0xff] %v1054_v16 }
 0x209   :  { %1579 = dma.vmem_to_hbm [thread:$0]  %s1572_s1, 65536, %s1574_s20, [#allocation5], %s1643_s14, %s1643_s14, %s1644_s15  }
 0x20a   :  { %1640 = dma.done.wait [#allocation5], 65536  }
 0x20b   :  { %1641 = vsyncadd [#allocation5], 4294901760 }
 0x20c   :  { %1584 = vsyncpa [#allocation4], 1 }
 0x20d   :  { %1585 = vsyncpa [#allocation5], 1 }

</bundles_post_ra>
